<compile_context>
chip_gen: v7x
topology: tpu7x:2x2x1
jax: 0.10.0
libtpu: 0.0.40
codegen_flags: <defaults>
</compile_context>

<pallas_src>
import functools
import math

import jax
import jax.numpy as jnp
from jax.experimental import pallas as pl
from jax.experimental.pallas import tpu as pltpu

ALPHA = 0.2          # LeakyReLU negative slope (constructor arg `alpha`)
LN_EPS = 1e-6        # custom LayerNorm eps (added to std, not var)
N_HEADS = 1
NEG_BIG = -1e30


# --------------------------------------------------------------------------
# Fused Pallas kernel: encoder GraphLayers + variational linear + decoder
# GraphLayer (pred node only) + output MLP, one patient per grid step.
# --------------------------------------------------------------------------
def _fused_vgnn_kernel(embed_ref, minc_ref, minr_ref, moutc_ref, moutr_ref,
                       enc_wt_ref, enc_b_ref, enc_a1_ref, enc_a2_ref,
                       par_wt_ref, par_b_ref,
                       dec_wt_ref, dec_b_ref, dec_a1_ref, dec_a2_ref,
                       dec_lw_ref, dec_lb_ref,
                       ol1w_ref, ol1b_ref, ol2w_ref, ol2b_ref,
                       hp_ref, logit_ref, *, alpha, eps):
    f32 = jnp.float32
    n_nodes = embed_ref.shape[0]

    mcol_in = minc_ref[0]        # (N, 1)
    mrow_in = minr_ref[0]        # (1, N)
    mcol_out = moutc_ref[0]      # (N, 1)
    mrow_out = moutr_ref[0]      # (1, N)

    def layer_norm(h):
        # custom LayerNorm: mean + *unbiased* std over last dim, eps added to std
        d = h.shape[-1]
        mean = jnp.mean(h, axis=-1, keepdims=True)
        diff = h - mean
        var = jnp.sum(diff * diff, axis=-1, keepdims=True) / (d - 1)
        return diff * pl.reciprocal(jnp.sqrt(var) + eps, approx=True)

    def attend(wh, wh_rows, a1, a2, mcol_rows, mrow):
        # e[i, j] = a1 . Wh_i + a2 . Wh_j   (1/d_h already folded into a1, a2)
        # wh: (N, H) keys/values; wh_rows: (R, H) query rows (R = N or 1)
        f1 = jnp.dot(wh_rows, a1, preferred_element_type=f32)               # (R, 1)
        f2 = jax.lax.dot_general(a2, wh, (((1,), (1,)), ((), ())),
                                 preferred_element_type=f32)                # (1, N)
        e = f1 + f2                                                         # (R, N)
        e = jnp.where(e > 0, e, alpha * e)                                  # LeakyReLU
        mask = mcol_rows * mrow                                             # (R, N)
        e = jnp.where(mask > 0, e, NEG_BIG)                                 # mask BEFORE exp
        m = jnp.max(e, axis=-1, keepdims=True)                              # per-row max (stability)
        p = jnp.exp(e - m) * mask                                           # masked edge weights
        rowsum = jnp.sum(p, axis=-1, keepdims=True)                         # (R, 1)
        iszero = (rowsum == 0.0).astype(f32)                                # unobserved rows
        num = jnp.dot(p, wh, preferred_element_type=f32) + iszero * wh_rows
        denom = jnp.where(rowsum == 0.0, 1.0, rowsum)
        return num * pl.reciprocal(denom, approx=True)                      # (R, H)

    # ---------------- encoder GraphLayers (concat=True: LN + ELU) -------------
    h = embed_ref[...]                                   # (N, F), shared initial features
    n_layers = enc_wt_ref.shape[0]
    for l in range(n_layers):                            # static unrolled loop
        wh = jnp.dot(h, enc_wt_ref[l], preferred_element_type=f32) + enc_b_ref[l]
        hl = attend(wh, wh, enc_a1_ref[l], enc_a2_ref[l], mcol_in, mrow_in)
        y = layer_norm(hl)
        h = jnp.where(y > 0, y, jnp.exp(y) - 1.0)        # ELU

    # ---------------- variational bottleneck (eval: z == mu) ------------------
    hp = jnp.dot(h, par_wt_ref[...], preferred_element_type=f32) + par_b_ref[...]   # (N, 2O)
    hp_ref[0] = hp.astype(hp_ref.dtype)                  # mu || logvar out (for KLD in wrapper)
    half = hp.shape[-1] // 2
    mu = hp[:, :half]                                    # (N, O)

    # ---------------- decoder GraphLayer: ONLY the predictive node row --------
    wh_d = jnp.dot(mu, dec_wt_ref[...], preferred_element_type=f32) + dec_b_ref[...]  # (N, Hd)
    wh_last = wh_d[n_nodes - 1:n_nodes, :]                                             # (1, Hd)
    hd = attend(wh_d, wh_last, dec_a1_ref[...], dec_a2_ref[...],
                mcol_out[n_nodes - 1:n_nodes, :], mrow_out)                            # (1, Hd)
    r = jnp.maximum(layer_norm(hd), 0.0)                                               # LN + ReLU
    z = jnp.dot(r, dec_lw_ref[...], preferred_element_type=f32) + dec_lb_ref[...]      # (1, O)

    # ---------------- out_layer: ReLU -> Linear -> ReLU -> (Dropout=id) -> Linear
    z = jnp.maximum(z, 0.0)
    z = jnp.maximum(jnp.dot(z, ol1w_ref[...], preferred_element_type=f32)
                    + ol1b_ref[...], 0.0)
    logit = jnp.dot(z, ol2w_ref[...], preferred_element_type=f32) + ol2b_ref[...]      # (1, 1)
    logit_ref[0] = logit.astype(logit_ref.dtype)


def _const_spec(arr):
    nd = arr.ndim
    return pl.BlockSpec(arr.shape, lambda i, _nd=nd: (0,) * _nd)


def _batch_spec(arr):
    nd = arr.ndim
    return pl.BlockSpec((1,) + arr.shape[1:], lambda i, _nd=nd: (i,) + (0,) * (_nd - 1))


def vgnn_fused_call(params, m_in, m_out, *, alpha, d_h):
    """One pallas_call running the whole VGNN forward for every patient."""
    B, N = m_in.shape
    embed = params["embed"].astype(jnp.float32)          # (N, F)
    scale = jnp.float32(1.0 / d_h)                       # fold 1/d_h into a1/a2

    enc_WT = jnp.stack([lp["W_T"] for lp in params["in_att"]])          # (L, F, F)
    enc_b = jnp.stack([lp["b"] for lp in params["in_att"]])             # (L, 1, F)
    enc_a1 = jnp.stack([lp["a1"] for lp in params["in_att"]]) * scale   # (L, F, 1)
    enc_a2 = jnp.stack([lp["a2"] for lp in params["in_att"]]) * scale   # (L, 1, F)

    par_WT = params["param_WT"]                                         # (F, 2O)
    two_o = par_WT.shape[1]
    par_b = params["param_b"].reshape(1, two_o)

    op = params["out_att"]
    dec_WT, dec_b = op["W_T"], op["b"]
    dec_a1, dec_a2 = op["a1"] * scale, op["a2"] * scale
    dec_lw, dec_lb = op["lin_WT"], op["lin_b"]

    ol1w = params["out_lin1_WT"]
    ol1b = params["out_lin1_b"].reshape(1, -1)
    ol2w = params["out_lin2_WT"]
    ol2b = params["out_lin2_b"].reshape(1, 1)

    m_in_c, m_in_r = m_in[:, :, None], m_in[:, None, :]
    m_out_c, m_out_r = m_out[:, :, None], m_out[:, None, :]

    operands = (embed, m_in_c, m_in_r, m_out_c, m_out_r,
                enc_WT, enc_b, enc_a1, enc_a2,
                par_WT, par_b,
                dec_WT, dec_b, dec_a1, dec_a2, dec_lw, dec_lb,
                ol1w, ol1b, ol2w, ol2b)

    in_specs = [
        _const_spec(embed),
        _batch_spec(m_in_c), _batch_spec(m_in_r),
        _batch_spec(m_out_c), _batch_spec(m_out_r),
        _const_spec(enc_WT), _const_spec(enc_b), _const_spec(enc_a1), _const_spec(enc_a2),
        _const_spec(par_WT), _const_spec(par_b),
        _const_spec(dec_WT), _const_spec(dec_b), _const_spec(dec_a1), _const_spec(dec_a2),
        _const_spec(dec_lw), _const_spec(dec_lb),
        _const_spec(ol1w), _const_spec(ol1b), _const_spec(ol2w), _const_spec(ol2b),
    ]
    out_specs = [
        pl.BlockSpec((1, N, two_o), lambda i: (i, 0, 0)),    # hp = mu || logvar
        pl.BlockSpec((1, 1, 1), lambda i: (i, 0, 0)),        # logits (pred node only)
    ]
    out_shape = (
        jax.ShapeDtypeStruct((B, N, two_o), jnp.float32),
        jax.ShapeDtypeStruct((B, 1, 1), jnp.float32),
    )

    kernel = functools.partial(_fused_vgnn_kernel, alpha=alpha, eps=LN_EPS)

    return pl.pallas_call(
        kernel,
        grid=(B,),
        in_specs=in_specs,
        out_specs=out_specs,
        out_shape=out_shape,
        compiler_params=pltpu.CompilerParams(dimension_semantics=("parallel",)),
    )(*operands)


# --------------------------------------------------------------------------
# Full VariationalGNN forward (mask building + KLD glue in plain JAX)
# --------------------------------------------------------------------------
def vgnn_forward(batch, params):
    batch = batch.astype(jnp.int32)
    B, n = batch.shape                       # n = num codes per patient
    N = n + 2                                # internal num_of_nodes (pad node 0 + pred node n+1)
    F = params["embed"].shape[1]
    d_h = math.sqrt(F * N_HEADS)

    # data_to_edges(): densified as node masks over the fully connected subgraph
    obs = (batch != 0).astype(jnp.float32)                           # (B, n)
    any_obs = jnp.sum(obs, axis=1, keepdims=True) > 0                # (B, 1)
    z1 = jnp.zeros((B, 1), jnp.float32)
    o1 = jnp.ones((B, 1), jnp.float32)
    m_in = jnp.concatenate([z1, obs, z1], axis=1)                    # nodes 1..n
    m_in = jnp.where(any_obs, m_in,
                     jnp.concatenate([o1, jnp.zeros((B, n + 1), jnp.float32)], axis=1))
    m_out = jnp.concatenate([z1, obs, o1], axis=1)                   # + predictive node n+1
    m_out = jnp.where(any_obs, m_out,
                      jnp.concatenate([jnp.zeros((B, n + 1), jnp.float32), o1], axis=1))

    hp, logits3 = vgnn_fused_call(params, m_in, m_out, alpha=ALPHA, d_h=d_h)

    # KLD over the patient's observed codes (integer gather, tiny — plain JAX)
    O = params["param_WT"].shape[1] // 2
    mu, logvar = hp[:, :, :O], hp[:, :, O:]
    idx = jnp.broadcast_to(batch[:, :, None], (B, n, O))
    mu_sel = jnp.take_along_axis(mu, idx, axis=1)
    lv_sel = jnp.take_along_axis(logvar, idx, axis=1)
    kld = 0.5 * jnp.sum(jnp.exp(lv_sel) - lv_sel - 1.0 + mu_sel ** 2, axis=(1, 2)) / n

    logits = logits3.reshape(B, 1)
    return logits, jnp.sum(kld)


# --------------------------------------------------------------------------
# Deterministic parameter init (shapes follow the module's __init__)
# --------------------------------------------------------------------------
def init_params(key, N, F, O, n_layers):
    keys = iter(jax.random.split(key, 64))

    def rnd(shape, scale):
        return (scale * jax.random.normal(next(keys), shape)).astype(jnp.float32)

    embed = rnd((N, F), 0.1).at[0].set(0.0)            # padding_idx=0

    in_att = []
    for _ in range(n_layers):
        in_att.append(dict(
            W_T=rnd((F, F), math.sqrt(2.0 / (2 * F))),
            b=rnd((1, F), 0.05),
            a1=rnd((F, 1), 0.3),                       # a[:, :H]
            a2=rnd((1, F), 0.3),                       # a[:, H:]
        ))

    out_att = dict(
        W_T=rnd((F, F), math.sqrt(2.0 / (2 * F))),
        b=rnd((1, F), 0.05),
        a1=rnd((F, 1), 0.3),
        a2=rnd((1, F), 0.3),
        lin_WT=rnd((F, O), math.sqrt(2.0 / (F + O))),
        lin_b=rnd((1, O), 0.05),
    )

    return dict(
        embed=embed,
        in_att=in_att,
        out_att=out_att,
        param_WT=rnd((O, 2 * O), math.sqrt(2.0 / (3 * O))),
        param_b=rnd((2 * O,), 0.05),
        out_lin1_WT=rnd((O, O), math.sqrt(2.0 / (2 * O))),
        out_lin1_b=rnd((O,), 0.05),
        out_lin2_WT=rnd((O, 1), math.sqrt(2.0 / (O + 1))),
        out_lin2_b=rnd((1,), 0.05),
    )


if __name__ == "__main__":
    key = jax.random.PRNGKey(0)
    B, n_codes = 2, 14                 # batch of 2 patients, 14 EHR code slots each
    F = O = 32                         # in_features == out_features (required by the module)
    n_layers = 2
    N = n_codes + 2                    # internal num_of_nodes = 16 (pad node + pred node)

    pkey, dkey = jax.random.split(key)
    params = init_params(pkey, N, F, O, n_layers)
    batch = jax.random.bernoulli(dkey, 0.5, (B, n_codes)).astype(jnp.int32)

    logits, kld_sum = jax.jit(vgnn_forward)(batch, params)
    jax.block_until_ready((logits, kld_sum))
    assert logits.shape == (B, 1) and kld_sum.shape == ()
    assert bool(jnp.all(jnp.isfinite(logits))) and bool(jnp.isfinite(kld_sum))
    print("KERNEL_OK")
</pallas_src>

<mosaic_0001>
module attributes {stable_mosaic.version = 11 : i64} {
  func.func @_fused_vgnn_kernel(%arg0: i32, %arg1: memref<16x32xf32, #tpu.memory_space<vmem>>, %arg2: memref<1x16x1xf32, #tpu.memory_space<vmem>>, %arg3: memref<1x1x16xf32, #tpu.memory_space<vmem>>, %arg4: memref<1x16x1xf32, #tpu.memory_space<vmem>>, %arg5: memref<1x1x16xf32, #tpu.memory_space<vmem>>, %arg6: memref<2x32x32xf32, #tpu.memory_space<vmem>>, %arg7: memref<2x1x32xf32, #tpu.memory_space<vmem>>, %arg8: memref<2x32x1xf32, #tpu.memory_space<vmem>>, %arg9: memref<2x1x32xf32, #tpu.memory_space<vmem>>, %arg10: memref<32x64xf32, #tpu.memory_space<vmem>>, %arg11: memref<1x64xf32, #tpu.memory_space<vmem>>, %arg12: memref<32x32xf32, #tpu.memory_space<vmem>>, %arg13: memref<1x32xf32, #tpu.memory_space<vmem>>, %arg14: memref<32x1xf32, #tpu.memory_space<vmem>>, %arg15: memref<1x32xf32, #tpu.memory_space<vmem>>, %arg16: memref<32x32xf32, #tpu.memory_space<vmem>>, %arg17: memref<1x32xf32, #tpu.memory_space<vmem>>, %arg18: memref<32x32xf32, #tpu.memory_space<vmem>>, %arg19: memref<1x32xf32, #tpu.memory_space<vmem>>, %arg20: memref<32x1xf32, #tpu.memory_space<vmem>>, %arg21: memref<1x1xf32, #tpu.memory_space<vmem>>, %arg22: memref<1x16x64xf32, #tpu.memory_space<vmem>>, %arg23: memref<1x1x1xf32, #tpu.memory_space<vmem>>) attributes {dimension_semantics = [#tpu.dimension_semantics<parallel>], iteration_bounds = array<i64: 2>, scalar_prefetch = 0 : i64, scratch_operands = 0 : i64, tpu.core_type = #tpu.core_type<tc>, window_params = [{pipeline_mode = #tpu.pipeline_mode<synchronous>, transform_indices = @transform_0, window_bounds = array<i64: 16, 32>}, {transform_indices = @transform_1, window_bounds = array<i64: 1, 16, 1>}, {transform_indices = @transform_2, window_bounds = array<i64: 1, 1, 16>}, {transform_indices = @transform_3, window_bounds = array<i64: 1, 16, 1>}, {transform_indices = @transform_4, window_bounds = array<i64: 1, 1, 16>}, {pipeline_mode = #tpu.pipeline_mode<synchronous>, transform_indices = @transform_5, window_bounds = array<i64: 2, 32, 32>}, {pipeline_mode = #tpu.pipeline_mode<synchronous>, transform_indices = @transform_6, window_bounds = array<i64: 2, 1, 32>}, {pipeline_mode = #tpu.pipeline_mode<synchronous>, transform_indices = @transform_7, window_bounds = array<i64: 2, 32, 1>}, {pipeline_mode = #tpu.pipeline_mode<synchronous>, transform_indices = @transform_8, window_bounds = array<i64: 2, 1, 32>}, {pipeline_mode = #tpu.pipeline_mode<synchronous>, transform_indices = @transform_9, window_bounds = array<i64: 32, 64>}, {pipeline_mode = #tpu.pipeline_mode<synchronous>, transform_indices = @transform_10, window_bounds = array<i64: 1, 64>}, {pipeline_mode = #tpu.pipeline_mode<synchronous>, transform_indices = @transform_11, window_bounds = array<i64: 32, 32>}, {pipeline_mode = #tpu.pipeline_mode<synchronous>, transform_indices = @transform_12, window_bounds = array<i64: 1, 32>}, {pipeline_mode = #tpu.pipeline_mode<synchronous>, transform_indices = @transform_13, window_bounds = array<i64: 32, 1>}, {pipeline_mode = #tpu.pipeline_mode<synchronous>, transform_indices = @transform_14, window_bounds = array<i64: 1, 32>}, {pipeline_mode = #tpu.pipeline_mode<synchronous>, transform_indices = @transform_15, window_bounds = array<i64: 32, 32>}, {pipeline_mode = #tpu.pipeline_mode<synchronous>, transform_indices = @transform_16, window_bounds = array<i64: 1, 32>}, {pipeline_mode = #tpu.pipeline_mode<synchronous>, transform_indices = @transform_17, window_bounds = array<i64: 32, 32>}, {pipeline_mode = #tpu.pipeline_mode<synchronous>, transform_indices = @transform_18, window_bounds = array<i64: 1, 32>}, {pipeline_mode = #tpu.pipeline_mode<synchronous>, transform_indices = @transform_19, window_bounds = array<i64: 32, 1>}, {pipeline_mode = #tpu.pipeline_mode<synchronous>, transform_indices = @transform_20, window_bounds = array<i64: 1, 1>}, {transform_indices = @transform_21, window_bounds = array<i64: 1, 16, 64>}, {transform_indices = @transform_22, window_bounds = array<i64: 1, 1, 1>}]} {
    %c0 = arith.constant 0 : index
    %c0_0 = arith.constant 0 : index
    %c0_1 = arith.constant 0 : index
    %0 = vector.load %arg2[%c0, %c0_0, %c0_1] : memref<1x16x1xf32, #tpu.memory_space<vmem>>, vector<1x16x1xf32>
    %1 = vector.shape_cast %0 : vector<1x16x1xf32> to vector<16x1xf32>
    %c0_2 = arith.constant 0 : index
    %c0_3 = arith.constant 0 : index
    %c0_4 = arith.constant 0 : index
    %2 = vector.load %arg3[%c0_2, %c0_3, %c0_4] : memref<1x1x16xf32, #tpu.memory_space<vmem>>, vector<1x1x16xf32>
    %3 = vector.shape_cast %2 : vector<1x1x16xf32> to vector<1x16xf32>
    %c0_5 = arith.constant 0 : index
    %c0_6 = arith.constant 0 : index
    %c0_7 = arith.constant 0 : index
    %4 = vector.load %arg4[%c0_5, %c0_6, %c0_7] : memref<1x16x1xf32, #tpu.memory_space<vmem>>, vector<1x16x1xf32>
    %5 = vector.shape_cast %4 : vector<1x16x1xf32> to vector<16x1xf32>
    %c0_8 = arith.constant 0 : index
    %c0_9 = arith.constant 0 : index
    %c0_10 = arith.constant 0 : index
    %6 = vector.load %arg5[%c0_8, %c0_9, %c0_10] : memref<1x1x16xf32, #tpu.memory_space<vmem>>, vector<1x1x16xf32>
    %7 = vector.shape_cast %6 : vector<1x1x16xf32> to vector<1x16xf32>
    %c0_11 = arith.constant 0 : index
    %c0_12 = arith.constant 0 : index
    %8 = vector.load %arg1[%c0_11, %c0_12] : memref<16x32xf32, #tpu.memory_space<vmem>>, vector<16x32xf32>
    %c0_13 = arith.constant 0 : index
    %c0_14 = arith.constant 0 : index
    %c0_15 = arith.constant 0 : index
    %9 = vector.load %arg6[%c0_13, %c0_14, %c0_15] : memref<2x32x32xf32, #tpu.memory_space<vmem>>, vector<1x32x32xf32>
    %10 = vector.shape_cast %9 : vector<1x32x32xf32> to vector<32x32xf32>
    %cst = arith.constant dense<0.000000e+00> : vector<16x32xf32>
    %11 = tpu.matmul %8, %10, %cst {dimension_numbers = #tpu.dot_dimension_numbers<[1], [0], [0], [1], [0, 0, 1, 1], [], []>} : vector<16x32xf32>, vector<32x32xf32>, vector<16x32xf32> -> vector<16x32xf32>
    %c0_16 = arith.constant 0 : index
    %c0_17 = arith.constant 0 : index
    %c0_18 = arith.constant 0 : index
    %12 = vector.load %arg7[%c0_16, %c0_17, %c0_18] : memref<2x1x32xf32, #tpu.memory_space<vmem>>, vector<1x1x32xf32>
    %13 = vector.shape_cast %12 : vector<1x1x32xf32> to vector<1x32xf32>
    %14 = vector.broadcast %13 : vector<1x32xf32> to vector<16x32xf32>
    %15 = arith.addf %11, %14 : vector<16x32xf32>
    %c0_19 = arith.constant 0 : index
    %c0_20 = arith.constant 0 : index
    %c0_21 = arith.constant 0 : index
    %16 = vector.load %arg8[%c0_19, %c0_20, %c0_21] : memref<2x32x1xf32, #tpu.memory_space<vmem>>, vector<1x32x1xf32>
    %17 = vector.shape_cast %16 : vector<1x32x1xf32> to vector<32x1xf32>
    %c0_22 = arith.constant 0 : index
    %c0_23 = arith.constant 0 : index
    %c0_24 = arith.constant 0 : index
    %18 = vector.load %arg9[%c0_22, %c0_23, %c0_24] : memref<2x1x32xf32, #tpu.memory_space<vmem>>, vector<1x1x32xf32>
    %19 = vector.shape_cast %18 : vector<1x1x32xf32> to vector<1x32xf32>
    %cst_25 = arith.constant dense<0.000000e+00> : vector<16x1xf32>
    %20 = tpu.matmul %15, %17, %cst_25 {dimension_numbers = #tpu.dot_dimension_numbers<[1], [0], [0], [1], [0, 0, 1, 1], [], []>} : vector<16x32xf32>, vector<32x1xf32>, vector<16x1xf32> -> vector<16x1xf32>
    %cst_26 = arith.constant dense<0.000000e+00> : vector<1x16xf32>
    %21 = tpu.matmul %19, %15, %cst_26 {dimension_numbers = #tpu.dot_dimension_numbers<[1], [1], [0], [0], [0, 0, 1, 0], [], []>} : vector<1x32xf32>, vector<16x32xf32>, vector<1x16xf32> -> vector<1x16xf32>
    %22 = vector.broadcast %20 : vector<16x1xf32> to vector<16x16xf32>
    %23 = vector.broadcast %21 : vector<1x16xf32> to vector<16x16xf32>
    %24 = arith.addf %22, %23 : vector<16x16xf32>
    %cst_27 = arith.constant 0.000000e+00 : f32
    %25 = vector.broadcast %cst_27 : f32 to vector<16x16xf32>
    %26 = arith.cmpf ogt, %24, %25 : vector<16x16xf32>
    %cst_28 = arith.constant 2.000000e-01 : f32
    %27 = vector.broadcast %cst_28 : f32 to vector<16x16xf32>
    %28 = arith.mulf %27, %24 : vector<16x16xf32>
    %29 = arith.select %26, %24, %28 : vector<16x16xi1>, vector<16x16xf32>
    %30 = vector.broadcast %1 : vector<16x1xf32> to vector<16x16xf32>
    %31 = vector.broadcast %3 : vector<1x16xf32> to vector<16x16xf32>
    %32 = arith.mulf %30, %31 : vector<16x16xf32>
    %cst_29 = arith.constant 0.000000e+00 : f32
    %33 = vector.broadcast %cst_29 : f32 to vector<16x16xf32>
    %34 = arith.cmpf ogt, %32, %33 : vector<16x16xf32>
    %cst_30 = arith.constant -1.000000e+30 : f32
    %35 = vector.broadcast %cst_30 : f32 to vector<16x16xf32>
    %36 = arith.select %34, %29, %35 : vector<16x16xi1>, vector<16x16xf32>
    %cst_31 = arith.constant dense<0xFF800000> : vector<16xf32>
    %37 = vector.multi_reduction <maximumf>, %36, %cst_31 [1] : vector<16x16xf32> to vector<16xf32>
    %38 = vector.shape_cast %37 : vector<16xf32> to vector<16x1xf32>
    %39 = vector.broadcast %38 : vector<16x1xf32> to vector<16x16xf32>
    %40 = arith.subf %36, %39 : vector<16x16xf32>
    %41 = math.exp %40 : vector<16x16xf32>
    %42 = arith.mulf %41, %32 : vector<16x16xf32>
    %cst_32 = arith.constant dense<0.000000e+00> : vector<16xf32>
    %43 = vector.multi_reduction <add>, %42, %cst_32 [1] : vector<16x16xf32> to vector<16xf32>
    %44 = vector.shape_cast %43 : vector<16xf32> to vector<16x1xf32>
    %cst_33 = arith.constant 0.000000e+00 : f32
    %45 = vector.broadcast %cst_33 : f32 to vector<16x1xf32>
    %46 = arith.cmpf oeq, %44, %45 : vector<16x1xf32>
    %47 = arith.extui %46 : vector<16x1xi1> to vector<16x1xi32>
    %48 = arith.sitofp %47 : vector<16x1xi32> to vector<16x1xf32>
    %cst_34 = arith.constant dense<0.000000e+00> : vector<16x32xf32>
    %49 = tpu.matmul %42, %15, %cst_34 {dimension_numbers = #tpu.dot_dimension_numbers<[1], [0], [0], [1], [0, 0, 1, 1], [], []>} : vector<16x16xf32>, vector<16x32xf32>, vector<16x32xf32> -> vector<16x32xf32>
    %50 = vector.broadcast %48 : vector<16x1xf32> to vector<16x32xf32>
    %51 = arith.mulf %50, %15 : vector<16x32xf32>
    %52 = arith.addf %49, %51 : vector<16x32xf32>
    %cst_35 = arith.constant 0.000000e+00 : f32
    %53 = vector.broadcast %cst_35 : f32 to vector<16x1xf32>
    %54 = arith.cmpf oeq, %44, %53 : vector<16x1xf32>
    %cst_36 = arith.constant 1.000000e+00 : f32
    %55 = vector.broadcast %cst_36 : f32 to vector<16x1xf32>
    %56 = arith.select %54, %55, %44 : vector<16x1xi1>, vector<16x1xf32>
    %57 = tpu.reciprocal %56 {approx = true} : vector<16x1xf32> -> vector<16x1xf32>
    %58 = vector.broadcast %57 : vector<16x1xf32> to vector<16x32xf32>
    %59 = arith.mulf %52, %58 : vector<16x32xf32>
    %cst_37 = arith.constant dense<0.000000e+00> : vector<16xf32>
    %60 = vector.multi_reduction <add>, %59, %cst_37 [1] : vector<16x32xf32> to vector<16xf32>
    %61 = vector.shape_cast %60 : vector<16xf32> to vector<16x1xf32>
    %cst_38 = arith.constant 3.200000e+01 : f32
    %62 = vector.broadcast %cst_38 : f32 to vector<16x1xf32>
    %63 = arith.divf %61, %62 : vector<16x1xf32>
    %64 = vector.broadcast %63 : vector<16x1xf32> to vector<16x32xf32>
    %65 = arith.subf %59, %64 : vector<16x32xf32>
    %66 = arith.mulf %65, %65 : vector<16x32xf32>
    %cst_39 = arith.constant dense<0.000000e+00> : vector<16xf32>
    %67 = vector.multi_reduction <add>, %66, %cst_39 [1] : vector<16x32xf32> to vector<16xf32>
    %68 = vector.shape_cast %67 : vector<16xf32> to vector<16x1xf32>
    %cst_40 = arith.constant 3.100000e+01 : f32
    %69 = vector.broadcast %cst_40 : f32 to vector<16x1xf32>
    %70 = arith.divf %68, %69 : vector<16x1xf32>
    %71 = math.sqrt %70 : vector<16x1xf32>
    %cst_41 = arith.constant 9.99999997E-7 : f32
    %72 = vector.broadcast %cst_41 : f32 to vector<16x1xf32>
    %73 = arith.addf %71, %72 : vector<16x1xf32>
    %74 = tpu.reciprocal %73 {approx = true} : vector<16x1xf32> -> vector<16x1xf32>
    %75 = vector.broadcast %74 : vector<16x1xf32> to vector<16x32xf32>
    %76 = arith.mulf %65, %75 : vector<16x32xf32>
    %cst_42 = arith.constant 0.000000e+00 : f32
    %77 = vector.broadcast %cst_42 : f32 to vector<16x32xf32>
    %78 = arith.cmpf ogt, %76, %77 : vector<16x32xf32>
    %79 = math.exp %76 : vector<16x32xf32>
    %cst_43 = arith.constant 1.000000e+00 : f32
    %80 = vector.broadcast %cst_43 : f32 to vector<16x32xf32>
    %81 = arith.subf %79, %80 : vector<16x32xf32>
    %82 = arith.select %78, %76, %81 : vector<16x32xi1>, vector<16x32xf32>
    %c1 = arith.constant 1 : index
    %c0_44 = arith.constant 0 : index
    %c0_45 = arith.constant 0 : index
    %83 = vector.load %arg6[%c1, %c0_44, %c0_45] : memref<2x32x32xf32, #tpu.memory_space<vmem>>, vector<1x32x32xf32>
    %84 = vector.shape_cast %83 : vector<1x32x32xf32> to vector<32x32xf32>
    %cst_46 = arith.constant dense<0.000000e+00> : vector<16x32xf32>
    %85 = tpu.matmul %82, %84, %cst_46 {dimension_numbers = #tpu.dot_dimension_numbers<[1], [0], [0], [1], [0, 0, 1, 1], [], []>} : vector<16x32xf32>, vector<32x32xf32>, vector<16x32xf32> -> vector<16x32xf32>
    %c1_47 = arith.constant 1 : index
    %c0_48 = arith.constant 0 : index
    %c0_49 = arith.constant 0 : index
    %86 = vector.load %arg7[%c1_47, %c0_48, %c0_49] : memref<2x1x32xf32, #tpu.memory_space<vmem>>, vector<1x1x32xf32>
    %87 = vector.shape_cast %86 : vector<1x1x32xf32> to vector<1x32xf32>
    %88 = vector.broadcast %87 : vector<1x32xf32> to vector<16x32xf32>
    %89 = arith.addf %85, %88 : vector<16x32xf32>
    %c1_50 = arith.constant 1 : index
    %c0_51 = arith.constant 0 : index
    %c0_52 = arith.constant 0 : index
    %90 = vector.load %arg8[%c1_50, %c0_51, %c0_52] : memref<2x32x1xf32, #tpu.memory_space<vmem>>, vector<1x32x1xf32>
    %91 = vector.shape_cast %90 : vector<1x32x1xf32> to vector<32x1xf32>
    %c1_53 = arith.constant 1 : index
    %c0_54 = arith.constant 0 : index
    %c0_55 = arith.constant 0 : index
    %92 = vector.load %arg9[%c1_53, %c0_54, %c0_55] : memref<2x1x32xf32, #tpu.memory_space<vmem>>, vector<1x1x32xf32>
    %93 = vector.shape_cast %92 : vector<1x1x32xf32> to vector<1x32xf32>
    %cst_56 = arith.constant dense<0.000000e+00> : vector<16x1xf32>
    %94 = tpu.matmul %89, %91, %cst_56 {dimension_numbers = #tpu.dot_dimension_numbers<[1], [0], [0], [1], [0, 0, 1, 1], [], []>} : vector<16x32xf32>, vector<32x1xf32>, vector<16x1xf32> -> vector<16x1xf32>
    %cst_57 = arith.constant dense<0.000000e+00> : vector<1x16xf32>
    %95 = tpu.matmul %93, %89, %cst_57 {dimension_numbers = #tpu.dot_dimension_numbers<[1], [1], [0], [0], [0, 0, 1, 0], [], []>} : vector<1x32xf32>, vector<16x32xf32>, vector<1x16xf32> -> vector<1x16xf32>
    %96 = vector.broadcast %94 : vector<16x1xf32> to vector<16x16xf32>
    %97 = vector.broadcast %95 : vector<1x16xf32> to vector<16x16xf32>
    %98 = arith.addf %96, %97 : vector<16x16xf32>
    %cst_58 = arith.constant 0.000000e+00 : f32
    %99 = vector.broadcast %cst_58 : f32 to vector<16x16xf32>
    %100 = arith.cmpf ogt, %98, %99 : vector<16x16xf32>
    %cst_59 = arith.constant 2.000000e-01 : f32
    %101 = vector.broadcast %cst_59 : f32 to vector<16x16xf32>
    %102 = arith.mulf %101, %98 : vector<16x16xf32>
    %103 = arith.select %100, %98, %102 : vector<16x16xi1>, vector<16x16xf32>
    %104 = vector.broadcast %1 : vector<16x1xf32> to vector<16x16xf32>
    %105 = vector.broadcast %3 : vector<1x16xf32> to vector<16x16xf32>
    %106 = arith.mulf %104, %105 : vector<16x16xf32>
    %cst_60 = arith.constant 0.000000e+00 : f32
    %107 = vector.broadcast %cst_60 : f32 to vector<16x16xf32>
    %108 = arith.cmpf ogt, %106, %107 : vector<16x16xf32>
    %cst_61 = arith.constant -1.000000e+30 : f32
    %109 = vector.broadcast %cst_61 : f32 to vector<16x16xf32>
    %110 = arith.select %108, %103, %109 : vector<16x16xi1>, vector<16x16xf32>
    %cst_62 = arith.constant dense<0xFF800000> : vector<16xf32>
    %111 = vector.multi_reduction <maximumf>, %110, %cst_62 [1] : vector<16x16xf32> to vector<16xf32>
    %112 = vector.shape_cast %111 : vector<16xf32> to vector<16x1xf32>
    %113 = vector.broadcast %112 : vector<16x1xf32> to vector<16x16xf32>
    %114 = arith.subf %110, %113 : vector<16x16xf32>
    %115 = math.exp %114 : vector<16x16xf32>
    %116 = arith.mulf %115, %106 : vector<16x16xf32>
    %cst_63 = arith.constant dense<0.000000e+00> : vector<16xf32>
    %117 = vector.multi_reduction <add>, %116, %cst_63 [1] : vector<16x16xf32> to vector<16xf32>
    %118 = vector.shape_cast %117 : vector<16xf32> to vector<16x1xf32>
    %cst_64 = arith.constant 0.000000e+00 : f32
    %119 = vector.broadcast %cst_64 : f32 to vector<16x1xf32>
    %120 = arith.cmpf oeq, %118, %119 : vector<16x1xf32>
    %121 = arith.extui %120 : vector<16x1xi1> to vector<16x1xi32>
    %122 = arith.sitofp %121 : vector<16x1xi32> to vector<16x1xf32>
    %cst_65 = arith.constant dense<0.000000e+00> : vector<16x32xf32>
    %123 = tpu.matmul %116, %89, %cst_65 {dimension_numbers = #tpu.dot_dimension_numbers<[1], [0], [0], [1], [0, 0, 1, 1], [], []>} : vector<16x16xf32>, vector<16x32xf32>, vector<16x32xf32> -> vector<16x32xf32>
    %124 = vector.broadcast %122 : vector<16x1xf32> to vector<16x32xf32>
    %125 = arith.mulf %124, %89 : vector<16x32xf32>
    %126 = arith.addf %123, %125 : vector<16x32xf32>
    %cst_66 = arith.constant 0.000000e+00 : f32
    %127 = vector.broadcast %cst_66 : f32 to vector<16x1xf32>
    %128 = arith.cmpf oeq, %118, %127 : vector<16x1xf32>
    %cst_67 = arith.constant 1.000000e+00 : f32
    %129 = vector.broadcast %cst_67 : f32 to vector<16x1xf32>
    %130 = arith.select %128, %129, %118 : vector<16x1xi1>, vector<16x1xf32>
    %131 = tpu.reciprocal %130 {approx = true} : vector<16x1xf32> -> vector<16x1xf32>
    %132 = vector.broadcast %131 : vector<16x1xf32> to vector<16x32xf32>
    %133 = arith.mulf %126, %132 : vector<16x32xf32>
    %cst_68 = arith.constant dense<0.000000e+00> : vector<16xf32>
    %134 = vector.multi_reduction <add>, %133, %cst_68 [1] : vector<16x32xf32> to vector<16xf32>
    %135 = vector.shape_cast %134 : vector<16xf32> to vector<16x1xf32>
    %cst_69 = arith.constant 3.200000e+01 : f32
    %136 = vector.broadcast %cst_69 : f32 to vector<16x1xf32>
    %137 = arith.divf %135, %136 : vector<16x1xf32>
    %138 = vector.broadcast %137 : vector<16x1xf32> to vector<16x32xf32>
    %139 = arith.subf %133, %138 : vector<16x32xf32>
    %140 = arith.mulf %139, %139 : vector<16x32xf32>
    %cst_70 = arith.constant dense<0.000000e+00> : vector<16xf32>
    %141 = vector.multi_reduction <add>, %140, %cst_70 [1] : vector<16x32xf32> to vector<16xf32>
    %142 = vector.shape_cast %141 : vector<16xf32> to vector<16x1xf32>
    %cst_71 = arith.constant 3.100000e+01 : f32
    %143 = vector.broadcast %cst_71 : f32 to vector<16x1xf32>
    %144 = arith.divf %142, %143 : vector<16x1xf32>
    %145 = math.sqrt %144 : vector<16x1xf32>
    %cst_72 = arith.constant 9.99999997E-7 : f32
    %146 = vector.broadcast %cst_72 : f32 to vector<16x1xf32>
    %147 = arith.addf %145, %146 : vector<16x1xf32>
    %148 = tpu.reciprocal %147 {approx = true} : vector<16x1xf32> -> vector<16x1xf32>
    %149 = vector.broadcast %148 : vector<16x1xf32> to vector<16x32xf32>
    %150 = arith.mulf %139, %149 : vector<16x32xf32>
    %cst_73 = arith.constant 0.000000e+00 : f32
    %151 = vector.broadcast %cst_73 : f32 to vector<16x32xf32>
    %152 = arith.cmpf ogt, %150, %151 : vector<16x32xf32>
    %153 = math.exp %150 : vector<16x32xf32>
    %cst_74 = arith.constant 1.000000e+00 : f32
    %154 = vector.broadcast %cst_74 : f32 to vector<16x32xf32>
    %155 = arith.subf %153, %154 : vector<16x32xf32>
    %156 = arith.select %152, %150, %155 : vector<16x32xi1>, vector<16x32xf32>
    %c0_75 = arith.constant 0 : index
    %c0_76 = arith.constant 0 : index
    %157 = vector.load %arg10[%c0_75, %c0_76] : memref<32x64xf32, #tpu.memory_space<vmem>>, vector<32x64xf32>
    %cst_77 = arith.constant dense<0.000000e+00> : vector<16x64xf32>
    %158 = tpu.matmul %156, %157, %cst_77 {dimension_numbers = #tpu.dot_dimension_numbers<[1], [0], [0], [1], [0, 0, 1, 1], [], []>} : vector<16x32xf32>, vector<32x64xf32>, vector<16x64xf32> -> vector<16x64xf32>
    %c0_78 = arith.constant 0 : index
    %c0_79 = arith.constant 0 : index
    %159 = vector.load %arg11[%c0_78, %c0_79] : memref<1x64xf32, #tpu.memory_space<vmem>>, vector<1x64xf32>
    %160 = vector.broadcast %159 : vector<1x64xf32> to vector<16x64xf32>
    %161 = arith.addf %158, %160 : vector<16x64xf32>
    %c0_80 = arith.constant 0 : index
    %c0_81 = arith.constant 0 : index
    %c0_82 = arith.constant 0 : index
    %162 = vector.load %arg22[%c0_80, %c0_81, %c0_82] : memref<1x16x64xf32, #tpu.memory_space<vmem>>, vector<1x16x64xf32>
    %163 = vector.shape_cast %162 : vector<1x16x64xf32> to vector<16x64xf32>
    %164 = vector.shape_cast %161 : vector<16x64xf32> to vector<1x16x64xf32>
    tpu.vector_store %arg22[%c0_80, %c0_81, %c0_82], %164 {strides = array<i32>} : memref<1x16x64xf32, #tpu.memory_space<vmem>>, vector<1x16x64xf32>,
    %165 = vector.extract_strided_slice %161 {offsets = [0, 0], sizes = [16, 32], strides = [1, 1]} : vector<16x64xf32> to vector<16x32xf32>
    %c0_83 = arith.constant 0 : index
    %c0_84 = arith.constant 0 : index
    %166 = vector.load %arg12[%c0_83, %c0_84] : memref<32x32xf32, #tpu.memory_space<vmem>>, vector<32x32xf32>
    %cst_85 = arith.constant dense<0.000000e+00> : vector<16x32xf32>
    %167 = tpu.matmul %165, %166, %cst_85 {dimension_numbers = #tpu.dot_dimension_numbers<[1], [0], [0], [1], [0, 0, 1, 1], [], []>} : vector<16x32xf32>, vector<32x32xf32>, vector<16x32xf32> -> vector<16x32xf32>
    %c0_86 = arith.constant 0 : index
    %c0_87 = arith.constant 0 : index
    %168 = vector.load %arg13[%c0_86, %c0_87] : memref<1x32xf32, #tpu.memory_space<vmem>>, vector<1x32xf32>
    %169 = vector.broadcast %168 : vector<1x32xf32> to vector<16x32xf32>
    %170 = arith.addf %167, %169 : vector<16x32xf32>
    %171 = vector.extract_strided_slice %170 {offsets = [15, 0], sizes = [1, 32], strides = [1, 1]} : vector<16x32xf32> to vector<1x32xf32>
    %c0_88 = arith.constant 0 : index
    %c0_89 = arith.constant 0 : index
    %172 = vector.load %arg14[%c0_88, %c0_89] : memref<32x1xf32, #tpu.memory_space<vmem>>, vector<32x1xf32>
    %c0_90 = arith.constant 0 : index
    %c0_91 = arith.constant 0 : index
    %173 = vector.load %arg15[%c0_90, %c0_91] : memref<1x32xf32, #tpu.memory_space<vmem>>, vector<1x32xf32>
    %174 = vector.extract_strided_slice %5 {offsets = [15, 0], sizes = [1, 1], strides = [1, 1]} : vector<16x1xf32> to vector<1x1xf32>
    %cst_92 = arith.constant dense<0.000000e+00> : vector<1x1xf32>
    %175 = tpu.matmul %171, %172, %cst_92 {dimension_numbers = #tpu.dot_dimension_numbers<[1], [0], [0], [1], [0, 0, 1, 1], [], []>} : vector<1x32xf32>, vector<32x1xf32>, vector<1x1xf32> -> vector<1x1xf32>
    %cst_93 = arith.constant dense<0.000000e+00> : vector<1x16xf32>
    %176 = tpu.matmul %173, %170, %cst_93 {dimension_numbers = #tpu.dot_dimension_numbers<[1], [1], [0], [0], [0, 0, 1, 0], [], []>} : vector<1x32xf32>, vector<16x32xf32>, vector<1x16xf32> -> vector<1x16xf32>
    %177 = vector.broadcast %175 : vector<1x1xf32> to vector<1x16xf32>
    %178 = arith.addf %177, %176 : vector<1x16xf32>
    %cst_94 = arith.constant 0.000000e+00 : f32
    %179 = vector.broadcast %cst_94 : f32 to vector<1x16xf32>
    %180 = arith.cmpf ogt, %178, %179 : vector<1x16xf32>
    %cst_95 = arith.constant 2.000000e-01 : f32
    %181 = vector.broadcast %cst_95 : f32 to vector<1x16xf32>
    %182 = arith.mulf %181, %178 : vector<1x16xf32>
    %183 = arith.select %180, %178, %182 : vector<1x16xi1>, vector<1x16xf32>
    %184 = vector.broadcast %174 : vector<1x1xf32> to vector<1x16xf32>
    %185 = arith.mulf %184, %7 : vector<1x16xf32>
    %cst_96 = arith.constant 0.000000e+00 : f32
    %186 = vector.broadcast %cst_96 : f32 to vector<1x16xf32>
    %187 = arith.cmpf ogt, %185, %186 : vector<1x16xf32>
    %cst_97 = arith.constant -1.000000e+30 : f32
    %188 = vector.broadcast %cst_97 : f32 to vector<1x16xf32>
    %189 = arith.select %187, %183, %188 : vector<1x16xi1>, vector<1x16xf32>
    %cst_98 = arith.constant dense<0xFF800000> : vector<1xf32>
    %190 = vector.multi_reduction <maximumf>, %189, %cst_98 [1] : vector<1x16xf32> to vector<1xf32>
    %191 = vector.shape_cast %190 : vector<1xf32> to vector<1x1xf32>
    %192 = vector.broadcast %191 : vector<1x1xf32> to vector<1x16xf32>
    %193 = arith.subf %189, %192 : vector<1x16xf32>
    %194 = math.exp %193 : vector<1x16xf32>
    %195 = arith.mulf %194, %185 : vector<1x16xf32>
    %cst_99 = arith.constant dense<0.000000e+00> : vector<1xf32>
    %196 = vector.multi_reduction <add>, %195, %cst_99 [1] : vector<1x16xf32> to vector<1xf32>
    %197 = vector.shape_cast %196 : vector<1xf32> to vector<1x1xf32>
    %cst_100 = arith.constant 0.000000e+00 : f32
    %198 = vector.broadcast %cst_100 : f32 to vector<1x1xf32>
    %199 = arith.cmpf oeq, %197, %198 : vector<1x1xf32>
    %200 = arith.extui %199 : vector<1x1xi1> to vector<1x1xi32>
    %201 = arith.sitofp %200 : vector<1x1xi32> to vector<1x1xf32>
    %cst_101 = arith.constant dense<0.000000e+00> : vector<1x32xf32>
    %202 = tpu.matmul %195, %170, %cst_101 {dimension_numbers = #tpu.dot_dimension_numbers<[1], [0], [0], [1], [0, 0, 1, 1], [], []>} : vector<1x16xf32>, vector<16x32xf32>, vector<1x32xf32> -> vector<1x32xf32>
    %203 = vector.broadcast %201 : vector<1x1xf32> to vector<1x32xf32>
    %204 = arith.mulf %203, %171 : vector<1x32xf32>
    %205 = arith.addf %202, %204 : vector<1x32xf32>
    %cst_102 = arith.constant 0.000000e+00 : f32
    %206 = vector.broadcast %cst_102 : f32 to vector<1x1xf32>
    %207 = arith.cmpf oeq, %197, %206 : vector<1x1xf32>
    %cst_103 = arith.constant 1.000000e+00 : f32
    %208 = vector.broadcast %cst_103 : f32 to vector<1x1xf32>
    %209 = arith.select %207, %208, %197 : vector<1x1xi1>, vector<1x1xf32>
    %210 = tpu.reciprocal %209 {approx = true} : vector<1x1xf32> -> vector<1x1xf32>
    %211 = vector.broadcast %210 : vector<1x1xf32> to vector<1x32xf32>
    %212 = arith.mulf %205, %211 : vector<1x32xf32>
    %cst_104 = arith.constant dense<0.000000e+00> : vector<1xf32>
    %213 = vector.multi_reduction <add>, %212, %cst_104 [1] : vector<1x32xf32> to vector<1xf32>
    %214 = vector.shape_cast %213 : vector<1xf32> to vector<1x1xf32>
    %cst_105 = arith.constant 3.200000e+01 : f32
    %215 = vector.broadcast %cst_105 : f32 to vector<1x1xf32>
    %216 = arith.divf %214, %215 : vector<1x1xf32>
    %217 = vector.broadcast %216 : vector<1x1xf32> to vector<1x32xf32>
    %218 = arith.subf %212, %217 : vector<1x32xf32>
    %219 = arith.mulf %218, %218 : vector<1x32xf32>
    %cst_106 = arith.constant dense<0.000000e+00> : vector<1xf32>
    %220 = vector.multi_reduction <add>, %219, %cst_106 [1] : vector<1x32xf32> to vector<1xf32>
    %221 = vector.shape_cast %220 : vector<1xf32> to vector<1x1xf32>
    %cst_107 = arith.constant 3.100000e+01 : f32
    %222 = vector.broadcast %cst_107 : f32 to vector<1x1xf32>
    %223 = arith.divf %221, %222 : vector<1x1xf32>
    %224 = math.sqrt %223 : vector<1x1xf32>
    %cst_108 = arith.constant 9.99999997E-7 : f32
    %225 = vector.broadcast %cst_108 : f32 to vector<1x1xf32>
    %226 = arith.addf %224, %225 : vector<1x1xf32>
    %227 = tpu.reciprocal %226 {approx = true} : vector<1x1xf32> -> vector<1x1xf32>
    %228 = vector.broadcast %227 : vector<1x1xf32> to vector<1x32xf32>
    %229 = arith.mulf %218, %228 : vector<1x32xf32>
    %cst_109 = arith.constant 0.000000e+00 : f32
    %230 = vector.broadcast %cst_109 : f32 to vector<1x32xf32>
    %231 = arith.maximumf %229, %230 : vector<1x32xf32>
    %c0_110 = arith.constant 0 : index
    %c0_111 = arith.constant 0 : index
    %232 = vector.load %arg16[%c0_110, %c0_111] : memref<32x32xf32, #tpu.memory_space<vmem>>, vector<32x32xf32>
    %cst_112 = arith.constant dense<0.000000e+00> : vector<1x32xf32>
    %233 = tpu.matmul %231, %232, %cst_112 {dimension_numbers = #tpu.dot_dimension_numbers<[1], [0], [0], [1], [0, 0, 1, 1], [], []>} : vector<1x32xf32>, vector<32x32xf32>, vector<1x32xf32> -> vector<1x32xf32>
    %c0_113 = arith.constant 0 : index
    %c0_114 = arith.constant 0 : index
    %234 = vector.load %arg17[%c0_113, %c0_114] : memref<1x32xf32, #tpu.memory_space<vmem>>, vector<1x32xf32>
    %235 = arith.addf %233, %234 : vector<1x32xf32>
    %cst_115 = arith.constant 0.000000e+00 : f32
    %236 = vector.broadcast %cst_115 : f32 to vector<1x32xf32>
    %237 = arith.maximumf %235, %236 : vector<1x32xf32>
    %c0_116 = arith.constant 0 : index
    %c0_117 = arith.constant 0 : index
    %238 = vector.load %arg18[%c0_116, %c0_117] : memref<32x32xf32, #tpu.memory_space<vmem>>, vector<32x32xf32>
    %cst_118 = arith.constant dense<0.000000e+00> : vector<1x32xf32>
    %239 = tpu.matmul %237, %238, %cst_118 {dimension_numbers = #tpu.dot_dimension_numbers<[1], [0], [0], [1], [0, 0, 1, 1], [], []>} : vector<1x32xf32>, vector<32x32xf32>, vector<1x32xf32> -> vector<1x32xf32>
    %c0_119 = arith.constant 0 : index
    %c0_120 = arith.constant 0 : index
    %240 = vector.load %arg19[%c0_119, %c0_120] : memref<1x32xf32, #tpu.memory_space<vmem>>, vector<1x32xf32>
    %241 = arith.addf %239, %240 : vector<1x32xf32>
    %cst_121 = arith.constant 0.000000e+00 : f32
    %242 = vector.broadcast %cst_121 : f32 to vector<1x32xf32>
    %243 = arith.maximumf %241, %242 : vector<1x32xf32>
    %c0_122 = arith.constant 0 : index
    %c0_123 = arith.constant 0 : index
    %244 = vector.load %arg20[%c0_122, %c0_123] : memref<32x1xf32, #tpu.memory_space<vmem>>, vector<32x1xf32>
    %cst_124 = arith.constant dense<0.000000e+00> : vector<1x1xf32>
    %245 = tpu.matmul %243, %244, %cst_124 {dimension_numbers = #tpu.dot_dimension_numbers<[1], [0], [0], [1], [0, 0, 1, 1], [], []>} : vector<1x32xf32>, vector<32x1xf32>, vector<1x1xf32> -> vector<1x1xf32>
    %c0_125 = arith.constant 0 : index
    %c0_126 = arith.constant 0 : index
    %246 = vector.load %arg21[%c0_125, %c0_126] : memref<1x1xf32, #tpu.memory_space<vmem>>, vector<1x1xf32>
    %247 = arith.addf %245, %246 : vector<1x1xf32>
    %c0_127 = arith.constant 0 : index
    %c0_128 = arith.constant 0 : index
    %c0_129 = arith.constant 0 : index
    %248 = vector.load %arg23[%c0_127, %c0_128, %c0_129] : memref<1x1x1xf32, #tpu.memory_space<vmem>>, vector<1x1x1xf32>
    %249 = vector.shape_cast %248 : vector<1x1x1xf32> to vector<1x1xf32>
    %250 = vector.shape_cast %247 : vector<1x1xf32> to vector<1x1x1xf32>
    tpu.vector_store %arg23[%c0_127, %c0_128, %c0_129], %250 {strides = array<i32>} : memref<1x1x1xf32, #tpu.memory_space<vmem>>, vector<1x1x1xf32>,
    return
  }
  func.func @transform_0(%arg0: i32) -> (i32, i32) {
    %c0_i32 = arith.constant 0 : i32
    %c0_i32_0 = arith.constant 0 : i32
    %c0_i32_1 = arith.constant 0 : i32
    return %c0_i32, %c0_i32_0 : i32, i32
  }
  func.func @transform_1(%arg0: i32) -> (i32, i32, i32) {
    %c0_i32 = arith.constant 0 : i32
    %c0_i32_0 = arith.constant 0 : i32
    %c0_i32_1 = arith.constant 0 : i32
    return %arg0, %c0_i32, %c0_i32_0 : i32, i32, i32
  }
  func.func @transform_2(%arg0: i32) -> (i32, i32, i32) {
    %c0_i32 = arith.constant 0 : i32
    %c0_i32_0 = arith.constant 0 : i32
    %c0_i32_1 = arith.constant 0 : i32
    return %arg0, %c0_i32, %c0_i32_0 : i32, i32, i32
  }
  func.func @transform_3(%arg0: i32) -> (i32, i32, i32) {
    %c0_i32 = arith.constant 0 : i32
    %c0_i32_0 = arith.constant 0 : i32
    %c0_i32_1 = arith.constant 0 : i32
    return %arg0, %c0_i32, %c0_i32_0 : i32, i32, i32
  }
  func.func @transform_4(%arg0: i32) -> (i32, i32, i32) {
    %c0_i32 = arith.constant 0 : i32
    %c0_i32_0 = arith.constant 0 : i32
    %c0_i32_1 = arith.constant 0 : i32
    return %arg0, %c0_i32, %c0_i32_0 : i32, i32, i32
  }
  func.func @transform_5(%arg0: i32) -> (i32, i32, i32) {
    %c0_i32 = arith.constant 0 : i32
    %c0_i32_0 = arith.constant 0 : i32
    %c0_i32_1 = arith.constant 0 : i32
    %c0_i32_2 = arith.constant 0 : i32
    return %c0_i32, %c0_i32_0, %c0_i32_1 : i32, i32, i32
  }
  func.func @transform_6(%arg0: i32) -> (i32, i32, i32) {
    %c0_i32 = arith.constant 0 : i32
    %c0_i32_0 = arith.constant 0 : i32
    %c0_i32_1 = arith.constant 0 : i32
    %c0_i32_2 = arith.constant 0 : i32
    return %c0_i32, %c0_i32_0, %c0_i32_1 : i32, i32, i32
  }
  func.func @transform_7(%arg0: i32) -> (i32, i32, i32) {
    %c0_i32 = arith.constant 0 : i32
    %c0_i32_0 = arith.constant 0 : i32
    %c0_i32_1 = arith.constant 0 : i32
    %c0_i32_2 = arith.constant 0 : i32
    return %c0_i32, %c0_i32_0, %c0_i32_1 : i32, i32, i32
  }
  func.func @transform_8(%arg0: i32) -> (i32, i32, i32) {
    %c0_i32 = arith.constant 0 : i32
    %c0_i32_0 = arith.constant 0 : i32
    %c0_i32_1 = arith.constant 0 : i32
    %c0_i32_2 = arith.constant 0 : i32
    return %c0_i32, %c0_i32_0, %c0_i32_1 : i32, i32, i32
  }
  func.func @transform_9(%arg0: i32) -> (i32, i32) {
    %c0_i32 = arith.constant 0 : i32
    %c0_i32_0 = arith.constant 0 : i32
    %c0_i32_1 = arith.constant 0 : i32
    return %c0_i32, %c0_i32_0 : i32, i32
  }
  func.func @transform_10(%arg0: i32) -> (i32, i32) {
    %c0_i32 = arith.constant 0 : i32
    %c0_i32_0 = arith.constant 0 : i32
    %c0_i32_1 = arith.constant 0 : i32
    return %c0_i32, %c0_i32_0 : i32, i32
  }
  func.func @transform_11(%arg0: i32) -> (i32, i32) {
    %c0_i32 = arith.constant 0 : i32
    %c0_i32_0 = arith.constant 0 : i32
    %c0_i32_1 = arith.constant 0 : i32
    return %c0_i32, %c0_i32_0 : i32, i32
  }
  func.func @transform_12(%arg0: i32) -> (i32, i32) {
    %c0_i32 = arith.constant 0 : i32
    %c0_i32_0 = arith.constant 0 : i32
    %c0_i32_1 = arith.constant 0 : i32
    return %c0_i32, %c0_i32_0 : i32, i32
  }
  func.func @transform_13(%arg0: i32) -> (i32, i32) {
    %c0_i32 = arith.constant 0 : i32
    %c0_i32_0 = arith.constant 0 : i32
    %c0_i32_1 = arith.constant 0 : i32
    return %c0_i32, %c0_i32_0 : i32, i32
  }
  func.func @transform_14(%arg0: i32) -> (i32, i32) {
    %c0_i32 = arith.constant 0 : i32
    %c0_i32_0 = arith.constant 0 : i32
    %c0_i32_1 = arith.constant 0 : i32
    return %c0_i32, %c0_i32_0 : i32, i32
  }
  func.func @transform_15(%arg0: i32) -> (i32, i32) {
    %c0_i32 = arith.constant 0 : i32
    %c0_i32_0 = arith.constant 0 : i32
    %c0_i32_1 = arith.constant 0 : i32
    return %c0_i32, %c0_i32_0 : i32, i32
  }
  func.func @transform_16(%arg0: i32) -> (i32, i32) {
    %c0_i32 = arith.constant 0 : i32
    %c0_i32_0 = arith.constant 0 : i32
    %c0_i32_1 = arith.constant 0 : i32
    return %c0_i32, %c0_i32_0 : i32, i32
  }
  func.func @transform_17(%arg0: i32) -> (i32, i32) {
    %c0_i32 = arith.constant 0 : i32
    %c0_i32_0 = arith.constant 0 : i32
    %c0_i32_1 = arith.constant 0 : i32
    return %c0_i32, %c0_i32_0 : i32, i32
  }
  func.func @transform_18(%arg0: i32) -> (i32, i32) {
    %c0_i32 = arith.constant 0 : i32
    %c0_i32_0 = arith.constant 0 : i32
    %c0_i32_1 = arith.constant 0 : i32
    return %c0_i32, %c0_i32_0 : i32, i32
  }
  func.func @transform_19(%arg0: i32) -> (i32, i32) {
    %c0_i32 = arith.constant 0 : i32
    %c0_i32_0 = arith.constant 0 : i32
    %c0_i32_1 = arith.constant 0 : i32
    return %c0_i32, %c0_i32_0 : i32, i32
  }
  func.func @transform_20(%arg0: i32) -> (i32, i32) {
    %c0_i32 = arith.constant 0 : i32
    %c0_i32_0 = arith.constant 0 : i32
    %c0_i32_1 = arith.constant 0 : i32
    return %c0_i32, %c0_i32_0 : i32, i32
  }
  func.func @transform_21(%arg0: i32) -> (i32, i32, i32) {
    %c0_i32 = arith.constant 0 : i32
    %c0_i32_0 = arith.constant 0 : i32
    %c0_i32_1 = arith.constant 0 : i32
    return %arg0, %c0_i32, %c0_i32_0 : i32, i32, i32
  }
  func.func @transform_22(%arg0: i32) -> (i32, i32, i32) {
    %c0_i32 = arith.constant 0 : i32
    %c0_i32_0 = arith.constant 0 : i32
    %c0_i32_1 = arith.constant 0 : i32
    return %arg0, %c0_i32, %c0_i32_0 : i32, i32, i32
  }
}

</mosaic_0001>

<bundles_post_ra>
// kernel: vgnn_forward.1
= control target key start
LH: loop header
LB: loop body
LE: loop exit
PB: predicated region body
PF: predicated region fallthrough
CT: control target
= control target key end

     0   :  { %s3082_s29 = smov 0   ;;  %s3399_s0 = inlined_call_operand.vmem [shape: f32[16,32], index: 0, kind: input, shape index: {}]   ;;  %s3400_s1 = inlined_call_operand.vmem [shape: f32[2,16,1], index: 1, kind: input, shape index: {}]   ;;  %s3401_s2 = inlined_call_operand.vmem [shape: f32[2,1,16], index: 2, kind: input, shape index: {}]   ;;  %s3402_s3 = inlined_call_operand.vmem [shape: f32[2,16,1], index: 3, kind: input, shape index: {}]   ;;  %s3403_s4 = inlined_call_operand.vmem [shape: f32[2,1,16], index: 4, kind: input, shape index: {}]   ;;  %s3404_s5 = inlined_call_operand.vmem [shape: f32[2,32,32], index: 5, kind: input, shape index: {}]   ;;  %s3405_s6 = inlined_call_operand.vmem [shape: f32[2,1,32], index: 6, kind: input, shape index: {}]   ;;  %s3406_s7 = inlined_call_operand.vmem [shape: f32[2,32,1], index: 7, kind: input, shape index: {}]   ;;  %s3407_s8 = inlined_call_operand.vmem [shape: f32[2,1,32], index: 8, kind: input, shape index: {}]   ;;  %s3408_s9 = inlined_call_operand.vmem [shape: f32[32,64], index: 9, kind: input, shape index: {}]   ;;  %s3409_s10 = inlined_call_operand.vmem [shape: f32[1,64], index: 10, kind: input, shape index: {}]   ;;  %s3410_s11 = inlined_call_operand.vmem [shape: f32[32,32], index: 11, kind: input, shape index: {}]   ;;  %s3411_s12 = inlined_call_operand.vmem [shape: f32[1,32], index: 12, kind: input, shape index: {}]   ;;  %s3412_s13 = inlined_call_operand.vmem [shape: f32[32,1], index: 13, kind: input, shape index: {}]   ;;  %s3413_s14 = inlined_call_operand.vmem [shape: f32[1,32], index: 14, kind: input, shape index: {}]   ;;  %s3414_s15 = inlined_call_operand.vmem [shape: f32[32,32], index: 15, kind: input, shape index: {}]   ;;  %s3415_s16 = inlined_call_operand.vmem [shape: f32[1,32], index: 16, kind: input, shape index: {}]   ;;  %s3416_s17 = inlined_call_operand.vmem [shape: f32[32,32], index: 17, kind: input, shape index: {}]   ;;  %s3417_s18 = inlined_call_operand.vmem [shape: f32[1,32], index: 18, kind: input, shape index: {}]   ;;  %s3418_s19 = inlined_call_operand.vmem [shape: f32[32,1], index: 19, kind: input, shape index: {}]   ;;  %s3419_s20 = inlined_call_operand.<no memory space> [shape: f32[1,1], index: 20, kind: input, shape index: {}]   ;;  %s3420_s21 = inlined_call_operand.vmem [shape: f32[2,16,64], index: 21, kind: output, shape index: {0}]   ;;  %s3421_s22 = inlined_call_operand.vmem [shape: f32[2,1,1], index: 22, kind: output, shape index: {1}]  }
   0x1   :  { %3426 = sst [smem:[#allocation3_spill]] %s3399_s0  ;;  %v28_v0 = vstv %s3419_s20 }
   0x2   :  { %3427 = sst [smem:[#allocation4_spill]] %s3400_s1  ;;  %29 = vst [vmem:[#allocation2] sm:$0x1] %v28_v0 }
   0x3   :  { %3428 = sst [smem:[#allocation5_spill]] %s3401_s2 }
   0x4   :  { %3429 = sst [smem:[#allocation6_spill]] %s3402_s3 }
   0x5   :  { %3430 = sst [smem:[#allocation7_spill]] %s3403_s4 }
   0x6   :  { %3431 = sst [smem:[#allocation8_spill]] %s3404_s5 }
   0x7   :  { %3432 = sst [smem:[#allocation9_spill]] %s3405_s6 }
   0x8   :  { %3433 = sst [smem:[#allocation10_spill]] %s3406_s7 }
   0x9 LB: > { %s2496_s30 = sadd.s32 4294967295, %s2958_s29   ;;  %p2500_p0 = scmp.ge.s32.totalorder %s2958_s29, 1  ;;  %s2958_s29 = sphi %s3082_s29, %s35_s29  }
   0xa   : > { %p643_p1 = scmp.lt.s32.totalorder %s2958_s29, 3 }
   0xc   : > { %p644_p2 = pnand %p2500_p0, %p643_p1 }
   0xd   : > { %s3434_s23 = sld [smem:[#allocation8_spill]] (!%p644_p2)  ;;  %vm761_vm0 = vcmask (!%p644_p2), 261120   ;;  %s3435_s27 = sld [smem:[#allocation3_spill]] (!%p644_p2)  ;;  %v2960_v15 = vmov (!%p644_p2), 0.0|0.0   ;;  %vm2961_vm1 = vmmov (!%p644_p2), 0   ;;  %v2962_v16 = vmov (!%p644_p2), 0.0  }
   0xe   : > { %647 = sbr.rel (%p644_p2) target bundleno = 4728 (0x1278), region = 104  ;;  %s3436_s7 = sld [smem:[#allocation10_spill]] (!%p644_p2)  ;;  %v2963_v17 = vmov (!%p644_p2), 0   ;;  %vm3134_vm2 = vmpackc.low (!%p644_p2), %vm761_vm0, %vm761_vm0  ;;  %v847_v25 = vld [vmem:[%s3407_s8] sm:$0x1] (!%p644_p2)  ;;  %v1012_v32 = vlaneseq (!%p644_p2)  ;;  %vm1046_vm5 = vcmask (!%p644_p2), 130048  }
   0xf   : > { %2903 = vset.pattern.permute.xlu1 (!%p644_p2), %v2963_v17  ;;  %2902 = vset.pattern.permute.xlu0 (!%p644_p2), %v2963_v17  ;;  %s3437_s3 = sld [smem:[#allocation9_spill]] (!%p644_p2)  ;;  %p719_p3 = scmp.lt.s32.totalorder (!%p644_p2), %s2496_s30, 1 }
  0x10   : > { %s3440_s5 = sld [smem:[#allocation4_spill]] (!%p644_p2)  ;;  %v3163_v33 = vshrl.u32 (!%p644_p2), %v1012_v32, 7  ;;  %s3441_s26 = sld [smem:[#allocation5_spill]] (!%p644_p2) }
  0x11   : > { %s3442_s20 = sld [smem:[#allocation6_spill]] (!%p644_p2) }
  0x12   : > { %v1014_v34 = vsub.s32 (!%p644_p2), 0, %v3163_v33 }
  0x13   : > { %v750_v1 = vld [vmem:[%s3434_s23] sm:$0xff] (!%p644_p2)  ;;  %v751_v2 = vld [vmem:[%s3434_s23 + $0x8] sm:$0xff] (!%p644_p2)  ;;  %v752_v3 = vld [vmem:[%s3434_s23 + $0x10] sm:$0xff] (!%p644_p2) }
  0x14   : > { %v2795_v4 = vpack.c.bf16 (!%p644_p2), %v751_v2, %v750_v1  ;;  %v753_v5 = vld [vmem:[%s3434_s23 + $0x18] sm:$0xff] (!%p644_p2)  ;;  %v748_v6 = vld [vmem:[%s3435_s27] sm:$0xff] (!%p644_p2)  ;;  %v844_v9 = vld [vmem:[%s3436_s7 + $0x8] sm:$0xff] (!%p644_p2) }
  0x15   : > { %v2799_v7 = vpack.c.bf16 %v753_v5, %v752_v3  ;;  %2651 = vmatprep.mubr.msk.f32.mxu0 %vm761_vm0, %v748_v6  ;;  %v843_v8 = vld [vmem:[%s3436_s7] sm:$0xff]  ;;  %v749_v11 = vld [vmem:[%s3435_s27 + $0x8] sm:$0xff]  ;;  %v845_v12 = vld [vmem:[%s3436_s7 + $0x10] sm:$0xff]  ;;  %s3445_s30 = smov (!%p719_p3, %s2496_s30), 1 }
  0x16   : > { %2796 = vmatprep.subr.bf16.mxu0 %v2795_v4  ;;  %v2803_v10 = vpack.c.bf16 %v844_v9, %v843_v8  ;;  %v846_v13 = vld [vmem:[%s3436_s7 + $0x18] sm:$0xff]  ;;  %v2507_v18 = vld [vmem:[%s3437_s3] ss:$0 sm:$0xff]  ;;  %s3157_s0 = sshll.u32 %s3445_s30, 4  ;;  %s726_s2 = scalar_lea.vmem %s3441_s26, %s3445_s30 }
  0x17   : > { %2798 = vmatpush3.bf16.msra.mxu0 %v2795_v4  ;;  %v2807_v14 = vpack.c.bf16 %v846_v13, %v845_v12  ;;  %s723_s24 = scalar_lea.vmem %s3440_s5, %s3157_s0  ;;  %v2515_v35 = vld [vmem:[%s726_s2] ss:$0 sm:$0xff]  ;;  %s731_s1 = scalar_lea.vmem %s3442_s20, %s3157_s0 }
  0x18   : > { %2800 = vmatprep.subr.bf16.mxu0 %v2799_v7  ;;  %2804 = vmatprep.subr.bf16.mxu1 %v2803_v10  ;;  %v743_v26 = vld [vmem:[%s723_s24] sm:$0xff]  ;;  %v744_v27 = vld [vmem:[%s723_s24 + $0x8] sm:$0xff]  ;;  %s3443_s20 = sld [smem:[#allocation7_spill]] }
  0x19   : > { %2806 = vmatpush3.bf16.msra.mxu1 %v2803_v10  ;;  %1026 = vperm.xlu1 %2903, %v743_v26   ;;  %v2522_v32 = vld [vmem:[%s3434_s23 + $0x20] sm:$0xff] }
  0x1a   : > { %2808 = vmatprep.subr.bf16.mxu1 %v2807_v14 }
  0x1b   : > { %2802 = vmatpush3.bf16.msra.mxu0 %v2799_v7 }
  0x1c   : > { %2811 = vmatprep.subr.bf16.mxu0 %v2960_v15 }
  0x1d   : > { %2810 = vmatpush3.bf16.msra.mxu1 %v2807_v14  ;;  %1031 = vperm.xlu1 %2903, %v744_v27  }
  0x1e   : > { %2652 = vmatmul.mubr.msk.f32.vlgmr.msra.gmra.mrb[0].mxu0 %vm761_vm0, %v749_v11 }
  0x1f   : > { %2669 = vmatprep.mubr.msk.f32.mxu0 %vm2961_vm1, %v2962_v16 }
  0x98   : > { %v1027_v36 = vpop.permute.xlu1 %1026 }
  0x99   : > { %v3172_v38 = vmul.f32 %v2515_v35, %v1027_v36  ;;  %v2524_v36 = vld [vmem:[%s3434_s23 + $0x30] sm:$0xff] }
  0x9b   : > { %vm1042_vm4 = vcmp.gt.f32.partialorder %v3172_v38, 0.0 }
  0x9c   : > { %v1032_v41 = vpop.permute.xlu1 %1031 }
  0x9d   : > { %v3175_v44 = vmul.f32 %v2515_v35, %v1032_v41  ;;  %v2523_v35 = vld [vmem:[%s3434_s23 + $0x28] sm:$0xff]  ;;  %v2530_v41 = vld [vmem:[%s3436_s7 + $0x20] sm:$0xff] }
  0x9f   : > { %vm1043_vm7 = vcmp.gt.f32.partialorder %v3175_v44, 0.0 }
  0xf1   : > { %v2653_v19 = vpop.f32.mrb[0].mxu0 }
  0xf2   : > { %v3128_v20 = vadd.f32 %v2653_v19, %v2507_v18  ;;  %v834_v21 = vpop.f32.mrb[1].mxu0 }
  0xf3   : > { %v3130_v22 = vadd.f32 %v2507_v18, %v834_v21 }
  0xf5   : > { %v2812_v24 = vpack.c.bf16 %v3128_v20, %v3130_v22  ;;  %2662 = vmatprep.mubr.msk.f32.mxu1 %vm761_vm0, %v3130_v22 }
  0xf6   : > { %2663 = vmatmul.mubr.msk.f32.vlgmr.msra.gmra.mrb[0].mxu1 %vm761_vm0, %v3128_v20 }
  0xf7   : > { %2814 = vmatpush3.bf16.xpose.msk.msra.mxu0 %vm3134_vm2, %v2812_v24  ;;  %2816 = vmatprep.subr.bf16.mxu1 %v2812_v24 }
  0xf8   : > { %2818 = vmatpush3.bf16.msra.mxu1 %v2812_v24 }
  0xfe   : > { %2670 = vmatmul.mubr.msk.f32.vlgmr.msra.gmra.mrb[2].mxu0 %vm761_vm0, %v847_v25 }
 0x1c9   : > { %v2664_v28 = vpop.f32.mrb[0].mxu1 }
 0x1ca   : > { %v920_v29 = vpop.f32.mrb[1].mxu1 }
 0x1cb   : > { %1004 = vperm.xlu0 %2902, %v920_v29  }
 0x1cf   : > { %1009 = vperm.xlu0 %2902, %v2664_v28  }
 0x1d1   : > { %v998_v30 = vpop.f32.mrb[2].mxu0 }
 0x1d2   : > { %v2671_v31 = vpop.f32.mrb[3].mxu0  ;;  %v1015_v37 = vrot.slane %v998_v30, %v1014_v34 }
 0x24a   : > { %v1005_v39 = vpop.permute.xlu0 %1004 }
 0x24b   : > { %v1016_v40 = vadd.f32 %v1015_v37, %v1005_v39  ;;  %v2525_v39 = vld [vmem:[%s3434_s23 + $0x38] sm:$0xff] }
 0x24d   : > { %v1020_v42 = vmul.f32 0.2, %v1016_v40  ;;  %vm1018_vm3 = vcmp.gt.f32.partialorder %v1016_v40, 0.0 }
 0x24e   : > { %v1010_v43 = vpop.permute.xlu0 %1009 }
 0x24f   : > { %v1017_v45 = vadd.f32 %v1015_v37, %v1010_v43  ;;  %v1022_v46 = vsel %vm1018_vm3, %v1016_v40, %v1020_v42  ;;  %v2819_v37 = vpack.c.bf16 %v2523_v35, %v2522_v32  ;;  %v2823_v40 = vpack.c.bf16 %v2525_v39, %v2524_v36  ;;  %v2531_v42 = vld [vmem:[%s3436_s7 + $0x28] sm:$0xff] }
 0x250   : > { %v1044_v47 = vsel %vm1042_vm4, %v1022_v46, -1e+30  ;;  %v2827_v43 = vpack.c.bf16 %v2531_v42, %v2530_v41 }
 0x251   : > { %v1021_v48 = vmul.f32 0.2, %v1017_v45  ;;  %v1047_v49 = vsel %vm1046_vm5, %v1044_v47, -inf  ;;  %vm1019_vm6 = vcmp.gt.f32.partialorder %v1017_v45, 0.0  ;;  %2820 = vmatprep.subr.bf16.mxu1 %v2819_v37 }
 0x252   : > { %1048 = vmax.xlane.f32.xlu0 %v1047_v49  ;;  %2828 = vmatprep.subr.bf16.mxu0 %v2827_v43 }
 0x253   : > { %v1023_v50 = vsel %vm1019_vm6, %v1017_v45, %v1021_v48  ;;  %2830 = vmatpush3.bf16.msra.mxu0 %v2827_v43 }
 0x254   : > { %v1045_v51 = vsel %vm1043_vm7, %v1023_v50, -1e+30 }
 0x255   : > { %v1050_v52 = vsel %vm1046_vm5, %v1045_v51, -inf }
 0x256   : > { %1051 = vmax.xlane.f32.xlu1 %v1050_v52 }
 0x2df   : > { %v1049_v53 = vpop.xlane.xlu0 %1048 }
 0x2e0   : > { %v1053_v54 = vsub.f32 %v1044_v47, %v1049_v53 }
 0x2e2   : > { %v1055_v55 = vmul.f32 1.442695, %v1053_v54 }
 0x2e3   : > { %v1052_v56 = vpop.xlane.xlu1 %1051 }
 0x2e4   : > { %2904 = vpow2.f32 %v1055_v55  ;;  %v1054_v57 = vsub.f32 %v1045_v51, %v1052_v56 }
 0x2e6   : > { %v1057_v58 = vmul.f32 1.442695, %v1054_v57 }
 0x2e8   : > { %2906 = vpow2.f32 %v1057_v58 }
 0x2ee   : > { %v2905_v59 = vpop.eup %2904 }
 0x2ef   : > { %v1059_v60 = vmul.f32 %v2905_v59, %v3172_v38 }
 0x2f1   : > { %2676 = vmatprep.mubr.msk.f32.mxu1 %vm1046_vm5, %v1059_v60  ;;  %v1061_v61 = vsel %vm1046_vm5, %v1059_v60, 0.0 }
 0x2f2   : > { %v2907_v62 = vpop.eup %2906  ;;  %1062 = vadd.xlane.f32.xlu0 %v1061_v61 }
 0x2f3   : > { %v1060_v63 = vmul.f32 %v2907_v62, %v3175_v44 }
 0x2f5   : > { %2677 = vmatmul.mubr.msk.f32.vlgmr.msra.gmra.mrb[2].mxu1 %vm1046_vm5, %v1060_v63  ;;  %v1064_v0 = vsel %vm1046_vm5, %v1060_v63, 0.0 }
 0x2f6   : > { %1065 = vadd.xlane.f32.xlu0 %v1064_v0  ;;  %2822 = vmatpush3.bf16.msra.mxu1 %v2819_v37 }
 0x2f7   : > { %2824 = vmatprep.subr.bf16.mxu1 %v2823_v40 }
 0x2fa   : > { %2826 = vmatpush3.bf16.msra.mxu1 %v2823_v40 }
 0x2fb   : > { %2835 = vmatprep.subr.bf16.mxu1 %v2960_v15 }
 0x37f   : > { %v1063_v1 = vpop.xlane.xlu0 %1062 }
 0x380   : > { %vm1067_vm9 = vcmp.eq.f32.partialorder %v1063_v1, 0.0 }
 0x381   : > { %v1156_v4 = vsel %vm1067_vm9, 1.0, %v1063_v1  ;;  %v2516_v6 = vsel %vm1067_vm9, 1.0, %v2962_v16 }
 0x382   : > { %v1073_v9 = vmul.f32 %v2516_v6, %v3130_v22 }
 0x383   : > { %v1066_v2 = vpop.xlane.xlu0 %1065 }
 0x384   : > { %vm1068_vm8 = vcmp.eq.f32.partialorder %v1066_v2, 0.0 }
 0x385   : > { %v1157_v3 = vsel %vm1068_vm8, 1.0, %v1066_v2  ;;  %v2517_v5 = vsel %vm1068_vm8, 1.0, %v2962_v16 }
 0x386   : > { %2908 = vrcp.f32 %v1157_v3  ;;  %v1074_v7 = vmul.f32 %v2517_v5, %v3128_v20 }
 0x387   : > { %2910 = vrcp.f32 %v1156_v4 }
 0x390   : > { %v2909_v12 = vpop.eup %2908 }
 0x391   : > { %v2911_v14 = vpop.eup %2910 }
 0x3c8   : > { %v2678_v8 = vpop.f32.mrb[2].mxu1 }
 0x3c9   : > { %v1153_v10 = vadd.f32 %v2678_v8, %v1074_v7  ;;  %v1147_v11 = vpop.f32.mrb[3].mxu1 }
 0x3ca   : > { %v1148_v13 = vadd.f32 %v1147_v11, %v1073_v9  ;;  %v2532_v9 = vld [vmem:[%s3436_s7 + $0x30] sm:$0xff] }
 0x3cb   : > { %v1161_v17 = vmul.f32 %v2909_v12, %v1153_v10  ;;  %v2533_v10 = vld [vmem:[%s3436_s7 + $0x38] sm:$0xff]  ;;  %v2527_v12 = vld [vmem:[%s3437_s3 + $0x1] ss:$0 sm:$0xff]  ;;  %s739_s7 = scalar_lea.vmem %s3420_s21, %s3157_s0  ;;  %s742_s0 = scalar_lea.vmem %s3421_s22, %s3445_s30 }
 0x3cc   : > { %v1160_v18 = vmul.f32 %v2911_v14, %v1148_v13  ;;  %v2831_v11 = vpack.c.bf16 %v2533_v10, %v2532_v9 }
 0x3cd   : > { %v1165_v19 = vsel %vm761_vm0, %v1161_v17, 0.0 }
 0x3ce   : > { %1166 = vadd.xlane.f32.xlu0 %v1165_v19  ;;  %v1162_v21 = vsel %vm761_vm0, %v1160_v18, 0.0  ;;  %2832 = vmatprep.subr.bf16.mxu0 %v2831_v11 }
 0x3cf   : > { %1163 = vadd.xlane.f32.xlu1 %v1162_v21  ;;  %2834 = vmatpush3.bf16.msra.mxu0 %v2831_v11  ;;  %v2534_v21 = vld [vmem:[%s3407_s8 + $0x1] sm:$0x1] }
 0x45b   : > { %v1167_v24 = vpop.xlane.xlu0 %1166 }
 0x45c   : > { %v1170_v25 = vmul.f32 0.03125, %v1167_v24  ;;  %v1164_v26 = vpop.xlane.xlu1 %1163 }
 0x45d   : > { %v1169_v20 = vmul.f32 0.03125, %v1164_v26 }
 0x45e   : > { %v1172_v27 = vsub.f32 %v1161_v17, %v1170_v25 }
 0x45f   : > { %v1171_v28 = vsub.f32 %v1160_v18, %v1169_v20 }
 0x460   : > { %v1174_v22 = vmul.f32 %v1172_v27, %v1172_v27 }
 0x461   : > { %v1173_v29 = vmul.f32 %v1171_v28, %v1171_v28 }
 0x462   : > { %v1178_v30 = vsel %vm761_vm0, %v1174_v22, 0.0 }
 0x463   : > { %1179 = vadd.xlane.f32.xlu0 %v1178_v30  ;;  %v1175_v31 = vsel %vm761_vm0, %v1173_v29, 0.0 }
 0x464   : > { %1176 = vadd.xlane.f32.xlu1 %v1175_v31 }
 0x4f0   : > { %v1180_v45 = vpop.xlane.xlu0 %1179 }
 0x4f1   : > { %v1183_v46 = vmul.f32 0.032258064, %v1180_v45  ;;  %v1177_v47 = vpop.xlane.xlu1 %1176 }
 0x4f2   : > { %v1182_v48 = vmul.f32 0.032258064, %v1177_v47 }
 0x4f3   : > { %2912 = vrsqrt.f32 %v1183_v46  ;;  %vm1193_vm10 = vcmp.eq.f32.partialorder %v1183_v46, inf  ;;  %v1196_v52 = vand.u32 2147483648, %v1183_v46  ;;  %vm1195_vm11 = vcmp.eq.f32.partialorder %v1183_v46, 0.0 }
 0x4f4   : > { %2914 = vrsqrt.f32 %v1182_v48  ;;  %vm1186_vm12 = vcmp.eq.f32.partialorder %v1182_v48, inf  ;;  %v1189_v55 = vand.u32 2147483648, %v1182_v48  ;;  %vm1188_vm13 = vcmp.eq.f32.partialorder %v1182_v48, 0.0 }
 0x4fd   : > { %v2913_v49 = vpop.eup %2912 }
 0x4fe   : > { %v2915_v50 = vpop.eup %2914  ;;  %v1192_v51 = vmul.f32 %v2913_v49, %v1183_v46 }
 0x4ff   : > { %v1185_v53 = vmul.f32 %v2915_v50, %v1182_v48 }
 0x500   : > { %v1194_v54 = vsel %vm1193_vm10, %v1183_v46, %v1192_v51 }
 0x501   : > { %v1197_v56 = vsel %vm1195_vm11, %v1196_v52, %v1194_v54  ;;  %v1187_v57 = vsel %vm1186_vm12, %v1182_v48, %v1185_v53 }
 0x502   : > { %v1199_v58 = vadd.f32 1e-06, %v1197_v56  ;;  %v1190_v59 = vsel %vm1188_vm13, %v1189_v55, %v1187_v57 }
 0x503   : > { %v1198_v60 = vadd.f32 1e-06, %v1190_v59 }
 0x504   : > { %2916 = vrcp.f32 %v1199_v58 }
 0x505   : > { %2918 = vrcp.f32 %v1198_v60 }
 0x50e   : > { %v2917_v61 = vpop.eup %2916 }
 0x50f   : > { %v2919_v62 = vpop.eup %2918  ;;  %v1203_v63 = vmul.f32 %v2917_v61, %v1172_v27 }
 0x510   : > { %v1202_v0 = vmul.f32 %v2919_v62, %v1171_v28 }
 0x511   : > { %v1208_v1 = vmul.f32 1.442695, %v1203_v63  ;;  %vm1205_vm15 = vcmp.gt.f32.partialorder %v1203_v63, 0.0 }
 0x512   : > { %v1206_v2 = vmul.f32 1.442695, %v1202_v0  ;;  %vm1204_vm14 = vcmp.gt.f32.partialorder %v1202_v0, 0.0 }
 0x513   : > { %2920 = vpow2.f32 %v1208_v1 }
 0x514   : > { %2922 = vpow2.f32 %v1206_v2 }
 0x51d   : > { %v2921_v3 = vpop.eup %2920 }
 0x51e   : > { %v2923_v4 = vpop.eup %2922  ;;  %v2521_v5 = vadd.f32 -1.0, %v2921_v3 }
 0x51f   : > { %v2520_v6 = vadd.f32 -1.0, %v2923_v4 }
 0x520   : > { %v1213_v8 = vsel %vm1205_vm15, %v1203_v63, %v2521_v5  ;;  %vm2028_vm15 = vcmask 130055  }
 0x521   : > { %v1212_v7 = vsel %vm1204_vm14, %v1202_v0, %v2520_v6  ;;  %vm1750_vm14 = vcmask 523264  }
 0x522   : > { %2687 = vmatprep.mubr.msk.f32.mxu1 %vm761_vm0, %v1212_v7 }
 0x523   : > { %2688 = vmatmul.mubr.msk.f32.vlgmr.msra.gmra.mrb[4].mxu1 %vm761_vm0, %v1213_v8 }
 0x524   : > { %2705 = vmatprep.mubr.msk.f32.mxu1 %vm2961_vm1, %v2962_v16 }
 0x5f6   : > { %v2689_v13 = vpop.f32.mrb[4].mxu1 }
 0x5f7   : > { %v1305_v14 = vadd.f32 %v2689_v13, %v2527_v12  ;;  %v1299_v17 = vpop.f32.mrb[5].mxu1 }
 0x5f8   : > { %v1300_v18 = vadd.f32 %v2527_v12, %v1299_v17  ;;  %v746_v17 = vld [vmem:[%s731_s1 + $0x8] sm:$0xff]  ;;  %s734_s1 = scalar_lea.vmem %s3443_s20, %s3445_s30 }
 0x5fa   : > { %v2836_v19 = vpack.c.bf16 %v1305_v14, %v1300_v18  ;;  %2698 = vmatprep.mubr.msk.f32.mxu0 %vm761_vm0, %v1300_v18 }
 0x5fb   : > { %2699 = vmatmul.mubr.msk.f32.vlgmr.msra.gmra.mrb[4].mxu0 %vm761_vm0, %v1305_v14 }
 0x5fc   : > { %2838 = vmatpush3.bf16.xpose.msk.msra.mxu1 %vm3134_vm2, %v2836_v19  ;;  %2840 = vmatprep.subr.bf16.mxu0 %v2836_v19 }
 0x5fd   : > { %2842 = vmatpush3.bf16.msra.mxu0 %v2836_v19  ;;  %v1659_v19 = vld [vmem:[%s3408_s9 + $0x8] sm:$0xff] }
 0x603   : > { %2706 = vmatmul.mubr.msk.f32.vlgmr.msra.gmra.mrb[6].mxu1 %vm761_vm0, %v2534_v21  ;;  %v1660_v21 = vld [vmem:[%s3408_s9 + $0x10] sm:$0xff] }
 0x6ce   : > { %v2700_v24 = vpop.f32.mrb[4].mxu0 }
 0x6cf   : > { %1476 = vperm.xlu0 %2902, %v2700_v24   ;;  %v1387_v25 = vpop.f32.mrb[5].mxu0 }
 0x6d0   : > { %1471 = vperm.xlu1 %2903, %v1387_v25   ;;  %v1661_v25 = vld [vmem:[%s3408_s9 + $0x18] sm:$0xff] }
 0x6d6   : > { %v1465_v26 = vpop.f32.mrb[6].mxu1 }
 0x6d7   : > { %v2707_v20 = vpop.f32.mrb[7].mxu1  ;;  %v1482_v27 = vrot.slane %v1465_v26, %v1014_v34  ;;  %v2847_v26 = vpack.c.bf16 %v1661_v25, %v1660_v21 }
 0x6d8   : > { %v1753_v20 = vld [vmem:[%s3410_s11] sm:$0xff] }
 0x74e   : > { %v1477_v28 = vpop.permute.xlu0 %1476 }
 0x74f   : > { %v1484_v22 = vadd.f32 %v1482_v27, %v1477_v28  ;;  %v1472_v29 = vpop.permute.xlu1 %1471 }
 0x750   : > { %v1483_v30 = vadd.f32 %v1482_v27, %v1472_v29  ;;  %v1754_v27 = vld [vmem:[%s3410_s11 + $0x8] sm:$0xff] }
 0x751   : > { %v1488_v31 = vmul.f32 0.2, %v1484_v22  ;;  %vm1486_vm3 = vcmp.gt.f32.partialorder %v1484_v22, 0.0  ;;  %v2851_v28 = vpack.c.bf16 %v1754_v27, %v1753_v20 }
 0x752   : > { %v1487_v32 = vmul.f32 0.2, %v1483_v30  ;;  %vm1485_vm6 = vcmp.gt.f32.partialorder %v1483_v30, 0.0 }
 0x753   : > { %v1490_v35 = vsel %vm1486_vm3, %v1484_v22, %v1488_v31  ;;  %2852 = vmatprep.subr.bf16.mxu1 %v2851_v28 }
 0x754   : > { %v1492_v36 = vsel %vm1043_vm7, %v1490_v35, -1e+30  ;;  %v1489_v37 = vsel %vm1485_vm6, %v1483_v30, %v1487_v32  ;;  %2854 = vmatpush3.bf16.msra.mxu1 %v2851_v28 }
 0x755   : > { %v1496_v39 = vsel %vm1046_vm5, %v1492_v36, -inf  ;;  %v1491_v40 = vsel %vm1042_vm4, %v1489_v37, -1e+30 }
 0x756   : > { %1497 = vmax.xlane.f32.xlu0 %v1496_v39  ;;  %v1493_v33 = vsel %vm1046_vm5, %v1491_v40, -inf }
 0x757   : > { %1494 = vmax.xlane.f32.xlu1 %v1493_v33 }
 0x7e3   : > { %v1498_v34 = vpop.xlane.xlu0 %1497 }
 0x7e4   : > { %v1500_v41 = vsub.f32 %v1492_v36, %v1498_v34  ;;  %v1495_v42 = vpop.xlane.xlu1 %1494 }
 0x7e5   : > { %v1499_v43 = vsub.f32 %v1491_v40, %v1495_v42 }
 0x7e6   : > { %v1503_v45 = vmul.f32 1.442695, %v1500_v41 }
 0x7e7   : > { %v1501_v46 = vmul.f32 1.442695, %v1499_v43 }
 0x7e8   : > { %2924 = vpow2.f32 %v1503_v45 }
 0x7e9   : > { %2926 = vpow2.f32 %v1501_v46 }
 0x7f2   : > { %v2925_v47 = vpop.eup %2924 }
 0x7f3   : > { %v2927_v48 = vpop.eup %2926  ;;  %v1506_v49 = vmul.f32 %v2925_v47, %v3175_v44 }
 0x7f4   : > { %v1505_v50 = vmul.f32 %v2927_v48, %v3172_v38 }
 0x7f5   : > { %v1510_v51 = vsel %vm1046_vm5, %v1506_v49, 0.0 }
 0x7f6   : > { %1511 = vadd.xlane.f32.xlu0 %v1510_v51  ;;  %2712 = vmatprep.mubr.msk.f32.mxu0 %vm1046_vm5, %v1505_v50  ;;  %v1507_v52 = vsel %vm1046_vm5, %v1505_v50, 0.0 }
 0x7f7   : > { %2713 = vmatmul.mubr.msk.f32.vlgmr.msra.gmra.mrb[6].mxu0 %vm1046_vm5, %v1506_v49  ;;  %1508 = vadd.xlane.f32.xlu1 %v1507_v52 }
 0x883   : > { %v1512_v53 = vpop.xlane.xlu0 %1511 }
 0x884   : > { %v1509_v54 = vpop.xlane.xlu1 %1508  ;;  %vm1514_vm4 = vcmp.eq.f32.partialorder %v1512_v53, 0.0 }
 0x885   : > { %vm1513_vm7 = vcmp.eq.f32.partialorder %v1509_v54, 0.0  ;;  %v1603_v55 = vsel %vm1514_vm4, 1.0, %v1512_v53  ;;  %v2541_v38 = vsel %vm1514_vm4, 1.0, %v2962_v16  ;;  %vm2126_vm4 = vcmask 253952  }
 0x886   : > { %v1602_v56 = vsel %vm1513_vm7, 1.0, %v1509_v54  ;;  %2928 = vrcp.f32 %v1603_v55  ;;  %v2540_v44 = vsel %vm1513_vm7, 1.0, %v2962_v16  ;;  %v1520_v57 = vmul.f32 %v2541_v38, %v1305_v14 }
 0x887   : > { %2930 = vrcp.f32 %v1602_v56  ;;  %v1519_v59 = vmul.f32 %v2540_v44, %v1300_v18  ;;  %v1658_v18 = vld [vmem:[%s3408_s9] sm:$0xff]  ;;  %v1755_v44 = vld [vmem:[%s3410_s11 + $0x10] sm:$0xff] }
 0x888   : > { %v2843_v24 = vpack.c.bf16 %v1659_v19, %v1658_v18  ;;  %v2556_v19 = vld [vmem:[%s734_s1] ss:$0 sm:$0xff] }
 0x88a   : > { %2844 = vmatprep.subr.bf16.mxu0 %v2843_v24 }
 0x88b   : > { %2846 = vmatpush3.bf16.msra.mxu0 %v2843_v24 }
 0x88c   : > { %2848 = vmatprep.subr.bf16.mxu0 %v2847_v26 }
 0x88f   : > { %2850 = vmatpush3.bf16.msra.mxu0 %v2847_v26 }
 0x890   : > { %v2929_v62 = vpop.eup %2928  ;;  %2859 = vmatprep.subr.bf16.mxu0 %v2960_v15 }
 0x891   : > { %v2931_v0 = vpop.eup %2930 }
 0x8ca   : > { %v2714_v58 = vpop.f32.mrb[6].mxu0 }
 0x8cb   : > { %v1599_v60 = vadd.f32 %v2714_v58, %v1520_v57  ;;  %v1593_v61 = vpop.f32.mrb[7].mxu0  ;;  %v1756_v57 = vld [vmem:[%s3410_s11 + $0x18] sm:$0xff] }
 0x8cc   : > { %v1594_v63 = vadd.f32 %v1593_v61, %v1519_v59  ;;  %v2855_v58 = vpack.c.bf16 %v1756_v57, %v1755_v44  ;;  %v1845_v59 = vld [vmem:[%s3412_s13] sm:$0xff]  ;;  %v2150_v44 = vld [vmem:[%s3414_s15 + $0x10] sm:$0xff] }
 0x8cd   : > { %v1607_v1 = vmul.f32 %v2929_v62, %v1599_v60  ;;  %v1846_v60 = vld [vmem:[%s3412_s13 + $0x8] sm:$0xff]  ;;  %v2546_v62 = vld [vmem:[%s3409_s10] ss:$0 sm:$0xff] }
 0x8ce   : > { %v1606_v2 = vmul.f32 %v2931_v0, %v1594_v63  ;;  %2856 = vmatprep.subr.bf16.mxu1 %v2855_v58  ;;  %v2860_v61 = vpack.c.bf16 %v1846_v60, %v1845_v59  ;;  %v2227_v60 = vld [vmem:[%s3416_s17] sm:$0xff] }
 0x8cf   : > { %v1611_v3 = vsel %vm761_vm0, %v1607_v1, 0.0  ;;  %2858 = vmatpush3.bf16.msra.mxu1 %v2855_v58  ;;  %v2151_v58 = vld [vmem:[%s3414_s15 + $0x18] sm:$0xff] }
 0x8d0   : > { %1612 = vadd.xlane.f32.xlu0 %v1611_v3  ;;  %v1608_v4 = vsel %vm761_vm0, %v1606_v2, 0.0  ;;  %2865 = vmatprep.subr.bf16.mxu1 %v2960_v15  ;;  %v1847_v3 = vld [vmem:[%s3412_s13 + $0x10] sm:$0xff]  ;;  %v2876_v59 = vpack.c.bf16 %v2151_v58, %v2150_v44 }
 0x8d1   : > { %1609 = vadd.xlane.f32.xlu1 %v1608_v4  ;;  %v1848_v4 = vld [vmem:[%s3412_s13 + $0x18] sm:$0xff] }
 0x95d   : > { %v1613_v5 = vpop.xlane.xlu0 %1612 }
 0x95e   : > { %v1615_v6 = vmul.f32 0.03125, %v1613_v5  ;;  %v1610_v7 = vpop.xlane.xlu1 %1609  ;;  %v2863_v5 = vpack.c.bf16 %v1848_v4, %v1847_v3 }
 0x95f   : > { %v1614_v8 = vmul.f32 0.03125, %v1610_v7 }
 0x960   : > { %v1617_v9 = vsub.f32 %v1607_v1, %v1615_v6  ;;  %v2549_v6 = vld [vmem:[%s3411_s12] ss:$0 sm:$0xff] }
 0x961   : > { %v1616_v10 = vsub.f32 %v1606_v2, %v1614_v8 }
 0x962   : > { %v1619_v11 = vmul.f32 %v1617_v9, %v1617_v9 }
 0x963   : > { %v1618_v12 = vmul.f32 %v1616_v10, %v1616_v10 }
 0x964   : > { %v1623_v13 = vsel %vm761_vm0, %v1619_v11, 0.0 }
 0x965   : > { %1624 = vadd.xlane.f32.xlu0 %v1623_v13  ;;  %v1620_v14 = vsel %vm761_vm0, %v1618_v12, 0.0  ;;  %v1849_v13 = vld [vmem:[%s3413_s14] sm:$0x1] }
 0x966   : > { %1621 = vadd.xlane.f32.xlu1 %v1620_v14 }
 0x97b   : > { %2013 = vperm.xlu0 %2902, %v746_v17  }
 0x9f2   : > { %v1625_v22 = vpop.xlane.xlu0 %1624 }
 0x9f3   : > { %v1627_v29 = vmul.f32 0.032258064, %v1625_v22  ;;  %v1622_v30 = vpop.xlane.xlu1 %1621 }
 0x9f4   : > { %v1626_v31 = vmul.f32 0.032258064, %v1622_v30 }
 0x9f5   : > { %2932 = vrsqrt.f32 %v1627_v29  ;;  %vm1637_vm8 = vcmp.eq.f32.partialorder %v1627_v29, inf  ;;  %v1640_v37 = vand.u32 2147483648, %v1627_v29  ;;  %vm1639_vm9 = vcmp.eq.f32.partialorder %v1627_v29, 0.0 }
 0x9f6   : > { %2934 = vrsqrt.f32 %v1626_v31  ;;  %vm1630_vm10 = vcmp.eq.f32.partialorder %v1626_v31, inf  ;;  %v1633_v33 = vand.u32 2147483648, %v1626_v31  ;;  %vm1632_vm11 = vcmp.eq.f32.partialorder %v1626_v31, 0.0 }
 0x9fa   : > { %v2014_v21 = vpop.permute.xlu0 %2013 }
 0x9fb   : > { %v2022_v26 = vmul.f32 %v2556_v19, %v2014_v21 }
 0x9fd   : > { %vm2023_vm3 = vcmp.gt.f32.partialorder %v2022_v26, 0.0 }
 0x9ff   : > { %v2933_v32 = vpop.eup %2932 }
 0xa00   : > { %v2935_v35 = vpop.eup %2934  ;;  %v1636_v36 = vmul.f32 %v2933_v32, %v1627_v29 }
 0xa01   : > { %v1629_v39 = vmul.f32 %v2935_v35, %v1626_v31 }
 0xa02   : > { %v1638_v40 = vsel %vm1637_vm8, %v1627_v29, %v1636_v36 }
 0xa03   : > { %v1641_v34 = vsel %vm1639_vm9, %v1640_v37, %v1638_v40  ;;  %v1631_v41 = vsel %vm1630_vm10, %v1626_v31, %v1629_v39 }
 0xa04   : > { %v1643_v42 = vadd.f32 1e-06, %v1641_v34  ;;  %v1634_v43 = vsel %vm1632_vm11, %v1633_v33, %v1631_v41 }
 0xa05   : > { %v1642_v45 = vadd.f32 1e-06, %v1634_v43 }
 0xa06   : > { %2936 = vrcp.f32 %v1643_v42 }
 0xa07   : > { %2938 = vrcp.f32 %v1642_v45 }
 0xa10   : > { %v2937_v46 = vpop.eup %2936 }
 0xa11   : > { %v2939_v47 = vpop.eup %2938  ;;  %v1647_v48 = vmul.f32 %v2937_v46, %v1617_v9 }
 0xa12   : > { %v1646_v49 = vmul.f32 %v2939_v47, %v1616_v10 }
 0xa13   : > { %v1652_v50 = vmul.f32 1.442695, %v1647_v48  ;;  %vm1649_vm13 = vcmp.gt.f32.partialorder %v1647_v48, 0.0 }
 0xa14   : > { %v1650_v51 = vmul.f32 1.442695, %v1646_v49  ;;  %vm1648_vm12 = vcmp.gt.f32.partialorder %v1646_v49, 0.0 }
 0xa15   : > { %2940 = vpow2.f32 %v1652_v50 }
 0xa16   : > { %2942 = vpow2.f32 %v1650_v51 }
 0xa1f   : > { %v2941_v52 = vpop.eup %2940 }
 0xa20   : > { %v2943_v53 = vpop.eup %2942  ;;  %v2545_v54 = vadd.f32 -1.0, %v2941_v52 }
 0xa21   : > { %v2544_v55 = vadd.f32 -1.0, %v2943_v53 }
 0xa22   : > { %v1657_v38 = vsel %vm1649_vm13, %v1647_v48, %v2545_v54 }
 0xa23   : > { %v1656_v56 = vsel %vm1648_vm12, %v1646_v49, %v2544_v55 }
 0xa24   : > { %2723 = vmatprep.mubr.msk.f32.mxu0 %vm761_vm0, %v1656_v56  ;;  %v2148_v56 = vld [vmem:[%s3414_s15] sm:$0xff] }
 0xa25   : > { %2724 = vmatmul.mubr.msk.f32.vlgmr.msra.gmra.mrb[8].mxu0 %vm761_vm0, %v1657_v38  ;;  %v2149_v38 = vld [vmem:[%s3414_s15 + $0x8] sm:$0xff] }
 0xa26   : > { %2745 = vmatprep.mubr.msk.f32.mxu0 %vm2961_vm1, %v2962_v16  ;;  %2861 = vmatpush3.bf16.msra.mxu0 %v2860_v61  ;;  %v2873_v57 = vpack.c.bf16 %v2149_v38, %v2148_v56  ;;  %v2228_v61 = vld [vmem:[%s3416_s17 + $0x8] sm:$0xff] }
 0xa27   : > { %2862 = vmatprep.subr.bf16.mxu0 %v2960_v15 }
 0xa2a   : > { %2864 = vmatpush3.bf16.msra.mxu0 %v2863_v5 }
 0xa2b   : > { %2869 = vmatprep.subr.bf16.mxu0 %v2960_v15 }
 0xaf8   : > { %v2725_v63 = vpop.f32.mrb[8].mxu0 }
 0xaf9   : > { %v1747_v0 = vadd.f32 %v2725_v63, %v2546_v62  ;;  %v1741_v1 = vpop.f32.mrb[9].mxu0 }
 0xafa   : > { %v1742_v2 = vadd.f32 %v2546_v62, %v1741_v1  ;;  %v2879_v62 = vpack.c.bf16 %v2228_v61, %v2227_v60 }
 0xafb   : > { %1752 = vst.msk [vmem:[%s739_s7 + $0x8] sm:$0xff] %vm1750_vm14, %v1747_v0 }
 0xafc   : > { %1751 = vst.msk [vmem:[%s739_s7] sm:$0xff] %vm1750_vm14, %v1742_v2  ;;  %2734 = vmatprep.mubr.msk.f32.mxu1 %vm761_vm0, %v1742_v2 }
 0xafd   : > { %2735 = vmatmul.mubr.msk.f32.vlgmr.msra.gmra.mrb[8].mxu1 %vm761_vm0, %v1747_v0 }
 0xafe   : > { %2752 = vmatprep.mubr.msk.f32.mxu1 %vm2961_vm1, %v2962_v16 }
 0xbd0   : > { %v2736_v7 = vpop.f32.mrb[8].mxu1 }
 0xbd1   : > { %v1842_v8 = vadd.f32 %v2736_v7, %v2549_v6  ;;  %v1836_v9 = vpop.f32.mrb[9].mxu1 }
 0xbd2   : > { %v1837_v10 = vadd.f32 %v2549_v6, %v1836_v9 }
 0xbd3   : > { %v1851_v11 = vrot.slane %v1842_v8, 7 }
 0xbd4   : > { %v2866_v12 = vpack.c.bf16 %v1842_v8, %v1837_v10  ;;  %v2229_v10 = vld [vmem:[%s3416_s17 + $0x10] sm:$0xff] }
 0xbd5   : > { %2746 = vmatmul.mubr.msk.f32.vlgmr.msra.gmra.mrb[10].mxu0 %vm761_vm0, %v1851_v11  ;;  %v2230_v11 = vld [vmem:[%s3416_s17 + $0x18] sm:$0xff] }
 0xbd6   : > { %2868 = vmatpush3.bf16.xpose.msk.msra.mxu1 %vm3134_vm2, %v2866_v12  ;;  %2871 = vmatpush3.bf16.msra.mxu0 %v2866_v12  ;;  %v2882_v12 = vpack.c.bf16 %v2230_v11, %v2229_v10 }
 0xbd7   : > { %2759 = vmatprep.mubr.msk.f32.mxu0 %vm2961_vm1, %v2962_v16  ;;  %2872 = vmatprep.subr.bf16.mxu1 %v2960_v15 }
 0xbd8   : > { %2878 = vmatprep.subr.bf16.mxu0 %v2960_v15 }
 0xbdd   : > { %2753 = vmatmul.mubr.msk.f32.vlgmr.msra.gmra.mrb[10].mxu1 %vm761_vm0, %v1849_v13  ;;  %v2306_v13 = vld [vmem:[%s3418_s19] sm:$0xff] }
 0xbde   : > { %2770 = vmatprep.mubr.msk.f32.mxu1 %vm2961_vm1, %v2962_v16  ;;  %2874 = vmatpush3.bf16.msra.mxu1 %v2873_v57 }
 0xbdf   : > { %2875 = vmatprep.subr.bf16.mxu1 %v2960_v15 }
 0xbe2   : > { %2877 = vmatpush3.bf16.msra.mxu1 %v2876_v59 }
 0xbe3   : > { %2884 = vmatprep.subr.bf16.mxu1 %v2960_v15 }
 0xca8   : > { %v1920_v14 = vpop.f32.mrb[10].mxu0 }
 0xca9   : > { %2004 = vperm.xlu1 %2903, %v1920_v14   ;;  %v2747_v23 = vpop.f32.mrb[11].mxu0  ;;  %v2307_v14 = vld [vmem:[%s3418_s19 + $0x8] sm:$0xff] }
 0xcaa   : > { %v2885_v23 = vpack.c.bf16 %v2307_v14, %v2306_v13 }
 0xcb0   : > { %v1998_v17 = vpop.f32.mrb[10].mxu1 }
 0xcb1   : > { %v2754_v18 = vpop.f32.mrb[11].mxu1 }
 0xd28   : > { %v2005_v24 = vpop.permute.xlu1 %2004 }
 0xd29   : > { %v2007_v25 = vadd.f32 %v2005_v24, %v1998_v17  ;;  %v2308_v24 = vld [vmem:[%s3418_s19 + $0x10] sm:$0xff] }
 0xd2b   : > { %vm2008_vm2 = vcmp.gt.f32.partialorder %v2007_v25, 0.0  ;;  %v2009_v20 = vmul.f32 0.2, %v2007_v25 }
 0xd2d   : > { %v2010_v27 = vsel %vm2008_vm2, %v2007_v25, %v2009_v20  ;;  %v2309_v25 = vld [vmem:[%s3418_s19 + $0x18] sm:$0xff] }
 0xd2e   : > { %v2025_v28 = vrot.slane %v2010_v27, 1 }
 0xd30   : > { %v2027_v22 = vsel %vm2023_vm3, %v2025_v28, -1e+30 }
 0xd31   : > { %v2029_v29 = vsel %vm2028_vm15, %v2027_v22, -inf }
 0xd32   : > { %2030 = vmax.xlane.f32.xlu1 %v2029_v29  ;;  %v2310_v29 = vld [vmem:[#allocation2] sm:$0x1] }
 0xdbf   : > { %v2031_v30 = vpop.xlane.xlu1 %2030 }
 0xdc0   : > { %v2032_v31 = vsub.f32 %v2027_v22, %v2031_v30 }
 0xdc2   : > { %v2033_v32 = vmul.f32 1.442695, %v2032_v31 }
 0xdc4   : > { %2944 = vpow2.f32 %v2033_v32 }
 0xdce   : > { %v2945_v35 = vpop.eup %2944 }
 0xdcf   : > { %v2035_v36 = vmul.f32 %v2945_v35, %v2022_v26  ;;  %v2231_v26 = vld [vmem:[%s3417_s18] sm:$0x1] }
 0xdd1   : > { %v2036_v37 = vsel %vm2028_vm15, %v2035_v36, 0.0  ;;  %v2044_v39 = vrot.slane %v2035_v36, 7 }
 0xdd2   : > { %2037 = vadd.xlane.f32.xlu0 %v2036_v37 }
 0xdd3   : > { %2760 = vmatmul.mubr.msk.f32.vlgmr.msra.gmra.mrb[12].mxu0 %vm1046_vm5, %v2044_v39 }
 0xdd4   : > { %2781 = vmatprep.mubr.msk.f32.mxu0 %vm2961_vm1, %v2962_v16  ;;  %2880 = vmatpush3.bf16.msra.mxu0 %v2879_v62 }
 0xdd5   : > { %2881 = vmatprep.subr.bf16.mxu0 %v2960_v15 }
 0xdd8   : > { %2883 = vmatpush3.bf16.msra.mxu0 %v2882_v12 }
 0xe5f   : > { %v2038_v40 = vpop.xlane.xlu0 %2037 }
 0xe60   : > { %vm2039_vm6 = vcmp.eq.f32.partialorder %v2038_v40, 0.0 }
 0xe61   : > { %v2120_v33 = vsel %vm2039_vm6, 1.0, %v2038_v40  ;;  %v2557_v34 = vsel %vm2039_vm6, 1.0, %v2962_v16 }
 0xe62   : > { %2946 = vrcp.f32 %v2120_v33  ;;  %v2042_v41 = vmul.f32 %v2557_v34, %v1842_v8 }
 0xe64   : > { %v2046_v43 = vrot.slane %v2042_v41, 7 }
 0xe6c   : > { %v2947_v42 = vpop.eup %2946 }
 0xe6d   : > { %v2123_v48 = vrot.slane %v2947_v42, 7 }
 0xea6   : > { %v2116_v45 = vpop.f32.mrb[12].mxu0 }
 0xea7   : > { %v2117_v46 = vadd.f32 %v2116_v45, %v2046_v43  ;;  %v2761_v47 = vpop.f32.mrb[13].mxu0 }
 0xea9   : > { %v2125_v49 = vmul.f32 %v2123_v48, %v2117_v46 }
 0xeab   : > { %v2127_v50 = vsel %vm2126_vm4, %v2125_v49, 0.0 }
 0xeac   : > { %2128 = vadd.xlane.f32.xlu1 %v2127_v50 }
 0xf39   : > { %v2129_v51 = vpop.xlane.xlu1 %2128 }
 0xf3a   : > { %v2130_v52 = vmul.f32 0.03125, %v2129_v51 }
 0xf3c   : > { %v2131_v53 = vsub.f32 %v2125_v49, %v2130_v52 }
 0xf3e   : > { %v2132_v54 = vmul.f32 %v2131_v53, %v2131_v53 }
 0xf40   : > { %v2133_v55 = vsel %vm2126_vm4, %v2132_v54, 0.0 }
 0xf41   : > { %2134 = vadd.xlane.f32.xlu0 %v2133_v55 }
 0xfce   : > { %v2135_v63 = vpop.xlane.xlu0 %2134 }
 0xfcf   : > { %v2136_v0 = vmul.f32 0.032258064, %v2135_v63 }
 0xfd1   : > { %2948 = vrsqrt.f32 %v2136_v0  ;;  %vm2139_vm5 = vcmp.eq.f32.partialorder %v2136_v0, inf  ;;  %v2142_v3 = vand.u32 2147483648, %v2136_v0  ;;  %vm2141_vm7 = vcmp.eq.f32.partialorder %v2136_v0, 0.0 }
 0xfdb   : > { %v2949_v1 = vpop.eup %2948 }
 0xfdc   : > { %v2138_v2 = vmul.f32 %v2949_v1, %v2136_v0 }
 0xfde   : > { %v2140_v4 = vsel %vm2139_vm5, %v2136_v0, %v2138_v2 }
 0xfdf   : > { %v2143_v5 = vsel %vm2141_vm7, %v2142_v3, %v2140_v4 }
 0xfe0   : > { %v2144_v6 = vadd.f32 1e-06, %v2143_v5 }
 0xfe2   : > { %2950 = vrcp.f32 %v2144_v6 }
 0xfec   : > { %v2951_v7 = vpop.eup %2950 }
 0xfed   : > { %v2146_v8 = vmul.f32 %v2951_v7, %v2131_v53 }
 0xfef   : > { %v2147_v9 = vmax.f32 %v2146_v8, 0.0 }
 0xff1   : > { %2771 = vmatmul.mubr.msk.f32.vlgmr.msra.gmra.mrb[12].mxu1 %vm761_vm0, %v2147_v9 }
 0xff2   : > { %2792 = vmatprep.mubr.msk.f32.mxu1 %vm2961_vm1, %v2962_v16  ;;  %2886 = vmatpush3.bf16.msra.mxu1 %v2885_v23  ;;  %v2152_v16 = vld [vmem:[%s3415_s16] sm:$0x1]  ;;  %vm2384_vm1 = vcmask 0  }
 0xff3   : > { %2887 = vmatprep.subr.bf16.mxu1 %v2960_v15  ;;  %v2888_v15 = vpack.c.bf16 %v2309_v25, %v2308_v24 }
 0xff6   : > { %2889 = vmatpush3.bf16.msra.mxu1 %v2888_v15 }
0x10c4   : > { %v2222_v17 = vpop.f32.mrb[12].mxu1 }
0x10c5   : > { %v2223_v18 = vadd.f32 %v2222_v17, %v2152_v16  ;;  %v2772_v19 = vpop.f32.mrb[13].mxu1 }
0x10c7   : > { %v2226_v21 = vmax.f32 %v2223_v18, 0.0 }
0x10c9   : > { %2782 = vmatmul.mubr.msk.f32.vlgmr.msra.gmra.mrb[14].mxu0 %vm761_vm0, %v2226_v21 }
0x119c   : > { %v2301_v20 = vpop.f32.mrb[14].mxu0 }
0x119d   : > { %v2302_v27 = vadd.f32 %v2301_v20, %v2231_v26  ;;  %v2783_v28 = vpop.f32.mrb[15].mxu0 }
0x119f   : > { %v2305_v22 = vmax.f32 %v2302_v27, 0.0 }
0x11a1   : > { %2793 = vmatmul.mubr.msk.f32.vlgmr.msra.gmra.mrb[14].mxu1 %vm761_vm0, %v2305_v22 }
0x1274   : > { %v2380_v30 = vpop.f32.mrb[14].mxu1 }
0x1275   : > { %v2381_v31 = vadd.f32 %v2380_v30, %v2310_v29  ;;  %v2794_v32 = vpop.f32.mrb[15].mxu1 }
0x1277   : > { %2385 = vst.msk [vmem:[%s742_s0] sm:$0x1] %vm2384_vm1, %v2381_v31 }
0x1278 PF: > { %s35_s29 = sadd.s32 1, %s2958_s29  }
0x1279   : > { %p32_p4 = scmp.ge.s32.totalorder %s35_s29, 4  }
0x127b   :  { %34 = sbr.rel (!%p32_p4) target bundleno = 9 (0x9), region = 159 }

</bundles_post_ra>
